<compile_context>
chip_gen: v5e
topology: v5e:2x2
jax: 0.10.0
libtpu: 0.0.40
codegen_flags: <defaults>
</compile_context>

<pallas_src>
import functools

import jax
import jax.numpy as jnp
from jax.experimental import pallas as pl
from jax.experimental.pallas import tpu as pltpu

INPUT_DIM = 784     # K: NOT padded — kernel consumes x at full extent
HIDDEN_DIM = 400
LATENT_DIM = 20

# Lane-aligned (padded) dims used inside the kernel.
H_PAD = 512         # 4 * 128  hidden (fc1 output)
N_PAD = 128         # 1 * 128  fused mu|logvar heads: 2*20 = 40 -> 128


def _round_up(n, m):
    return ((n + m - 1) // m) * m


def _pad_to(arr, shape):
    pads = [(0, t - s) for s, t in zip(arr.shape, shape)]
    return jnp.pad(arr, pads)


def encoder_kernel(x_ref, w1_ref, b1_ref, wh_ref, bh_ref, out_ref):
    # Cast the x tile to bf16 in-kernel (no wrapper pad/cast pass over x).
    x_bf16 = x_ref[...].astype(jnp.bfloat16)

    # fc1: bf16 MXU matmul, f32 accumulation; bias + ReLU epilogue in f32
    # (safe on v5e which has no bf16 VALU).
    h = jnp.dot(x_bf16, w1_ref[...], preferred_element_type=jnp.float32)
    h = jnp.maximum(h + b1_ref[...], 0.0)

    # Single cast of h feeding the fused (mu|logvar) head matmul.
    h_bf16 = h.astype(jnp.bfloat16)
    out = jnp.dot(h_bf16, wh_ref[...], preferred_element_type=jnp.float32)
    out_ref[...] = (out + bh_ref[...]).astype(out_ref.dtype)


def prepare_encoder_params(w1, b1, wmu, bmu, wlv, blv):
    """One-time parameter prep (hoisted out of the per-call forward).

    Fuses the two latent heads and pads/casts to kernel layout:
      w1: (784, 512) bf16   b1: (1, 512) f32
      wh: (512, 128) bf16   bh: (1, 128) f32
    Zero-padding is mathematically inert (zero cols of w1 -> ReLU(0)=0 hidden
    lanes hit zero rows of wh).
    """
    w_heads = jnp.concatenate([wmu, wlv], axis=1)   # (400, 40)
    b_heads = jnp.concatenate([bmu, blv], axis=1)   # (1, 40)

    w1_p = _pad_to(w1, (INPUT_DIM, H_PAD)).astype(jnp.bfloat16)
    b1_p = _pad_to(b1, (1, H_PAD)).astype(jnp.float32)
    wh_p = _pad_to(w_heads, (H_PAD, N_PAD)).astype(jnp.bfloat16)
    bh_p = _pad_to(b_heads, (1, N_PAD)).astype(jnp.float32)
    return w1_p, b1_p, wh_p, bh_p


def _choose_batch_tile(B, block_b):
    # >= 2 tiles when the batch allows it so dimension_semantics=("parallel",)
    # can shard across v7x's two TensorCores; tiles sized to ~B/num_tiles
    # (rounded to 8 sublanes) to avoid over-padding; single full-extent block
    # for tiny batches.
    want = 2 if B >= 16 else 1
    num_tiles = max(pl.cdiv(B, block_b), want)
    tb = _round_up(pl.cdiv(B, num_tiles), 8)
    return min(tb, B)


@functools.partial(jax.jit, static_argnames=("block_b",))
def encoder_forward(x, w1_p, b1_p, wh_p, bh_p, *, block_b=512):
    """x: (B, 784) f32.  Weights must come from prepare_encoder_params."""
    B = x.shape[0]
    tb = _choose_batch_tile(B, block_b)
    grid = (pl.cdiv(B, tb),)

    flops = 2 * B * (INPUT_DIM * H_PAD + H_PAD * N_PAD)
    bytes_accessed = (
        B * INPUT_DIM * 4          # x read directly as f32
        + INPUT_DIM * H_PAD * 2    # w1 (bf16)
        + H_PAD * N_PAD * 2        # fused head weights (bf16)
        + (H_PAD + N_PAD) * 4      # biases (f32)
        + B * N_PAD * 4            # fused output (f32)
    )

    out = pl.pallas_call(
        encoder_kernel,
        out_shape=jax.ShapeDtypeStruct((B, N_PAD), jnp.float32),
        grid=grid,
        in_specs=[
            # x: batch-tiled, full 784-wide K block (== full array dim).
            pl.BlockSpec((tb, INPUT_DIM), lambda i: (i, 0)),
            # Weights / biases: VMEM-resident across the whole grid.
            pl.BlockSpec((INPUT_DIM, H_PAD), lambda i: (0, 0)),
            pl.BlockSpec((1, H_PAD), lambda i: (0, 0)),
            pl.BlockSpec((H_PAD, N_PAD), lambda i: (0, 0)),
            pl.BlockSpec((1, N_PAD), lambda i: (0, 0)),
        ],
        out_specs=pl.BlockSpec((tb, N_PAD), lambda i: (i, 0)),
        compiler_params=pltpu.CompilerParams(
            dimension_semantics=("parallel",),
            vmem_limit_bytes=32 * 1024 * 1024,
        ),
        cost_estimate=pl.CostEstimate(
            flops=flops, transcendentals=0, bytes_accessed=bytes_accessed
        ),
    )(x, w1_p, b1_p, wh_p, bh_p)

    # Partial final block rows (if any) are never exposed: slice to B and to
    # the real 2*latent lanes.
    mu = out[:B, :LATENT_DIM]
    logvar = out[:B, LATENT_DIM:2 * LATENT_DIM]
    return mu, logvar


def init_params(key):
    """Deterministic synthetic parameters (PyTorch Linear default-style uniform)."""
    k1, k2, k3, k4, k5, k6 = jax.random.split(key, 6)

    def uniform(k, shape, fan_in):
        bound = 1.0 / jnp.sqrt(fan_in)
        return jax.random.uniform(k, shape, jnp.float32, -bound, bound)

    # stored as (in, out); bias as (1, out) for broadcasting inside the kernel
    w1 = uniform(k1, (INPUT_DIM, HIDDEN_DIM), INPUT_DIM)
    b1 = uniform(k2, (1, HIDDEN_DIM), INPUT_DIM)
    wmu = uniform(k3, (HIDDEN_DIM, LATENT_DIM), HIDDEN_DIM)
    bmu = uniform(k4, (1, LATENT_DIM), HIDDEN_DIM)
    wlv = uniform(k5, (HIDDEN_DIM, LATENT_DIM), HIDDEN_DIM)
    blv = uniform(k6, (1, LATENT_DIM), HIDDEN_DIM)
    return w1, b1, wmu, bmu, wlv, blv


if __name__ == "__main__":
    key = jax.random.PRNGKey(0)
    k_params, k_x = jax.random.split(key)

    raw_params = init_params(k_params)

    # One-time weight prep (head fusion + pad + bf16 cast), outside the
    # per-call forward path.
    kernel_params = jax.block_until_ready(prepare_encoder_params(*raw_params))

    # Small batch of flattened MNIST-like images: [B, 784]
    B = 8
    x = jax.random.uniform(k_x, (B, INPUT_DIM), jnp.float32)

    mu, logvar = encoder_forward(x, *kernel_params)
    jax.block_until_ready((mu, logvar))
    assert mu.shape == (B, LATENT_DIM) and logvar.shape == (B, LATENT_DIM)

    w1, b1, wmu, bmu, wlv, blv = raw_params

    # Reference 1: same bf16-input / f32-accumulate math as the kernel.
    x_bf = x.astype(jnp.bfloat16)
    h_ref = jnp.maximum(
        jnp.dot(x_bf, w1.astype(jnp.bfloat16),
                preferred_element_type=jnp.float32) + b1, 0.0)
    h_bf = h_ref.astype(jnp.bfloat16)
    mu_ref = jnp.dot(h_bf, wmu.astype(jnp.bfloat16),
                     preferred_element_type=jnp.float32) + bmu
    lv_ref = jnp.dot(h_bf, wlv.astype(jnp.bfloat16),
                     preferred_element_type=jnp.float32) + blv
    assert jnp.allclose(mu, mu_ref, atol=2e-3, rtol=2e-3)
    assert jnp.allclose(logvar, lv_ref, atol=2e-3, rtol=2e-3)

    # Reference 2: full-f32 PyTorch-equivalent math (loose tol for bf16 inputs).
    h_f32 = jnp.maximum(x @ w1 + b1, 0.0)
    mu_f32 = h_f32 @ wmu + bmu
    lv_f32 = h_f32 @ wlv + blv
    assert jnp.allclose(mu, mu_f32, atol=5e-2, rtol=5e-2)
    assert jnp.allclose(logvar, lv_f32, atol=5e-2, rtol=5e-2)

    print("KERNEL_OK")
</pallas_src>

<mosaic_0001>
module attributes {stable_mosaic.version = 11 : i64} {
  func.func @encoder_kernel(%arg0: i32, %arg1: memref<8x784xf32, #tpu.memory_space<vmem>>, %arg2: memref<784x512xbf16, #tpu.memory_space<vmem>>, %arg3: memref<1x512xf32, #tpu.memory_space<vmem>>, %arg4: memref<512x128xbf16, #tpu.memory_space<vmem>>, %arg5: memref<1x128xf32, #tpu.memory_space<vmem>>, %arg6: memref<8x128xf32, #tpu.memory_space<vmem>>) attributes {dimension_semantics = [#tpu.dimension_semantics<parallel>], iteration_bounds = array<i64: 1>, scalar_prefetch = 0 : i64, scratch_operands = 0 : i64, tpu.core_type = #tpu.core_type<tc>, window_params = [{transform_indices = @transform_0, window_bounds = array<i64: 8, 784>}, {pipeline_mode = #tpu.pipeline_mode<synchronous>, transform_indices = @transform_1, window_bounds = array<i64: 784, 512>}, {pipeline_mode = #tpu.pipeline_mode<synchronous>, transform_indices = @transform_2, window_bounds = array<i64: 1, 512>}, {pipeline_mode = #tpu.pipeline_mode<synchronous>, transform_indices = @transform_3, window_bounds = array<i64: 512, 128>}, {pipeline_mode = #tpu.pipeline_mode<synchronous>, transform_indices = @transform_4, window_bounds = array<i64: 1, 128>}, {transform_indices = @transform_5, window_bounds = array<i64: 8, 128>}]} {
    %c0 = arith.constant 0 : index
    %c0_0 = arith.constant 0 : index
    %0 = vector.load %arg1[%c0, %c0_0] : memref<8x784xf32, #tpu.memory_space<vmem>>, vector<8x784xf32>
    %1 = arith.truncf %0 : vector<8x784xf32> to vector<8x784xbf16>
    %c0_1 = arith.constant 0 : index
    %c0_2 = arith.constant 0 : index
    %2 = vector.load %arg2[%c0_1, %c0_2] : memref<784x512xbf16, #tpu.memory_space<vmem>>, vector<784x512xbf16>
    %cst = arith.constant dense<0.000000e+00> : vector<8x512xf32>
    %3 = tpu.matmul %1, %2, %cst {dimension_numbers = #tpu.dot_dimension_numbers<[1], [0], [0], [1], [0, 0, 1, 1], [], []>} : vector<8x784xbf16>, vector<784x512xbf16>, vector<8x512xf32> -> vector<8x512xf32>
    %c0_3 = arith.constant 0 : index
    %c0_4 = arith.constant 0 : index
    %4 = vector.load %arg3[%c0_3, %c0_4] : memref<1x512xf32, #tpu.memory_space<vmem>>, vector<1x512xf32>
    %5 = vector.broadcast %4 : vector<1x512xf32> to vector<8x512xf32>
    %6 = arith.addf %3, %5 : vector<8x512xf32>
    %cst_5 = arith.constant 0.000000e+00 : f32
    %7 = vector.broadcast %cst_5 : f32 to vector<8x512xf32>
    %8 = arith.maximumf %6, %7 : vector<8x512xf32>
    %9 = arith.truncf %8 : vector<8x512xf32> to vector<8x512xbf16>
    %c0_6 = arith.constant 0 : index
    %c0_7 = arith.constant 0 : index
    %10 = vector.load %arg4[%c0_6, %c0_7] : memref<512x128xbf16, #tpu.memory_space<vmem>>, vector<512x128xbf16>
    %cst_8 = arith.constant dense<0.000000e+00> : vector<8x128xf32>
    %11 = tpu.matmul %9, %10, %cst_8 {dimension_numbers = #tpu.dot_dimension_numbers<[1], [0], [0], [1], [0, 0, 1, 1], [], []>} : vector<8x512xbf16>, vector<512x128xbf16>, vector<8x128xf32> -> vector<8x128xf32>
    %c0_9 = arith.constant 0 : index
    %c0_10 = arith.constant 0 : index
    %12 = vector.load %arg5[%c0_9, %c0_10] : memref<1x128xf32, #tpu.memory_space<vmem>>, vector<1x128xf32>
    %13 = vector.broadcast %12 : vector<1x128xf32> to vector<8x128xf32>
    %14 = arith.addf %11, %13 : vector<8x128xf32>
    %c0_11 = arith.constant 0 : index
    %c0_12 = arith.constant 0 : index
    %15 = vector.load %arg6[%c0_11, %c0_12] : memref<8x128xf32, #tpu.memory_space<vmem>>, vector<8x128xf32>
    tpu.vector_store %arg6[%c0_11, %c0_12], %14 {strides = array<i32>} : memref<8x128xf32, #tpu.memory_space<vmem>>, vector<8x128xf32>,
    return
  }
  func.func @transform_0(%arg0: i32) -> (i32, i32) {
    %c0_i32 = arith.constant 0 : i32
    %c0_i32_0 = arith.constant 0 : i32
    return %arg0, %c0_i32 : i32, i32
  }
  func.func @transform_1(%arg0: i32) -> (i32, i32) {
    %c0_i32 = arith.constant 0 : i32
    %c0_i32_0 = arith.constant 0 : i32
    %c0_i32_1 = arith.constant 0 : i32
    return %c0_i32, %c0_i32_0 : i32, i32
  }
  func.func @transform_2(%arg0: i32) -> (i32, i32) {
    %c0_i32 = arith.constant 0 : i32
    %c0_i32_0 = arith.constant 0 : i32
    %c0_i32_1 = arith.constant 0 : i32
    return %c0_i32, %c0_i32_0 : i32, i32
  }
  func.func @transform_3(%arg0: i32) -> (i32, i32) {
    %c0_i32 = arith.constant 0 : i32
    %c0_i32_0 = arith.constant 0 : i32
    %c0_i32_1 = arith.constant 0 : i32
    return %c0_i32, %c0_i32_0 : i32, i32
  }
  func.func @transform_4(%arg0: i32) -> (i32, i32) {
    %c0_i32 = arith.constant 0 : i32
    %c0_i32_0 = arith.constant 0 : i32
    %c0_i32_1 = arith.constant 0 : i32
    return %c0_i32, %c0_i32_0 : i32, i32
  }
  func.func @transform_5(%arg0: i32) -> (i32, i32) {
    %c0_i32 = arith.constant 0 : i32
    %c0_i32_0 = arith.constant 0 : i32
    return %arg0, %c0_i32 : i32, i32
  }
}

</mosaic_0001>

<bundles_post_ra>
// kernel: encoder_forward.1
= control target key start
LH: loop header
LB: loop body
LE: loop exit
PB: predicated region body
PF: predicated region fallthrough
CT: control target
= control target key end

     0   :  { %10 = vsyncpa [#allocation3], 0  ;;  %s3351_s0 = inlined_call_operand.hbm [shape: f32[8,784], index: 0, kind: input, shape index: {}]   ;;  %s3352_s1 = inlined_call_operand.hbm [shape: bf16[784,512], index: 1, kind: input, shape index: {}]   ;;  %s3353_s2 = inlined_call_operand.hbm [shape: f32[1,512], index: 2, kind: input, shape index: {}]   ;;  %s3354_s3 = inlined_call_operand.hbm [shape: bf16[512,128], index: 3, kind: input, shape index: {}]   ;;  %s3355_s4 = inlined_call_operand.vmem [shape: f32[1,128], index: 4, kind: input, shape index: {}]   ;;  %s3356_s5 = inlined_call_operand.vmem [shape: f32[8,128], index: 5, kind: output, shape index: {}]  }
   0x1   :  { %11 = vsyncpa [#allocation5], 0  ;;  %s28_s20 = sshll.u32 %s3352_s1, 4  ;;  %s29_s20 = int_to_ptr.hbm [resolvable:$true] %s28_s20 }
   0x2   :  { %12 = vsyncpa [#allocation8], 0  ;;  %s3231_s21 = smov [#allocation4]   ;;  %s18_s25 = sshll.u32 %s3351_s0, 4  ;;  %s19_s25 = int_to_ptr.hbm [resolvable:$true] %s18_s25 }
   0x3   :  { %s30_s22 = sshll.u32 %s3231_s21, 4  ;;  %s3232_s26 = smov 256   ;;  %s31_s22 = int_to_ptr.vmem [resolvable:$true] %s30_s22 }
   0x4   :  { %s3233_s27 = smov 16   ;;  %s3234_s28 = smov [#allocation2]  }
   0x5   :  { %36 = dma.hbm_to_vmem [thread:$0]  %s29_s20, 25088, %s31_s22, [#allocation5], %s3232_s26, %s3232_s26, %s3233_s27  }
   0x6   :  { %s20_s29 = sshll.u32 %s3234_s28, 4  ;;  %s42_s7 = sshll.u32 %s3353_s2, 4  ;;  %s21_s29 = int_to_ptr.vmem [resolvable:$true] %s20_s29  ;;  %s43_s7 = int_to_ptr.hbm [resolvable:$true] %s42_s7 }
   0x7   :  { %23 = dma.hbm_to_vmem [thread:$0]  %s19_s25, 896, %s21_s29, [#allocation3]  }
   0x8   :  { %s52_s9 = sshll.u32 %s3354_s3, 4  ;;  %s3235_s10 = smov [#allocation6]   ;;  %s53_s9 = int_to_ptr.hbm [resolvable:$true] %s52_s9 }
   0x9   :  { %s44_s11 = sshll.u32 %s3235_s10, 4  ;;  %s3236_s0 = smov [#allocation7]   ;;  %s45_s11 = int_to_ptr.vmem [resolvable:$true] %s44_s11 }
   0xa   :  { %47 = dma.hbm_to_vmem [thread:$0]  %s43_s7, 64, %s45_s11, [#allocation5]  }
   0xb   :  { %s54_s12 = sshll.u32 %s3236_s0, 4  ;;  %s3237_s13 = smov 64   ;;  %s55_s12 = int_to_ptr.vmem [resolvable:$true] %s54_s12 }
   0xc   :  { %s3238_s14 = smov 4  }
   0xd   :  { %60 = dma.hbm_to_vmem [thread:$0]  %s53_s9, 4096, %s55_s12, [#allocation8], %s3237_s13, %s3237_s13, %s3238_s14  }
   0xe   :  { %3225 = dma.done.wait [#allocation3], 896  }
   0xf   :  { %3226 = vsyncadd [#allocation3], 4294966400 }
  0x10   :  { %3227 = dma.done.wait [#allocation5], 25152  }
  0x11   :  { %3228 = vsyncadd [#allocation5], 4294942144 }
  0x12   :  { %3229 = dma.done.wait [#allocation8], 4096  }
  0x13   :  { %3230 = vsyncadd [#allocation8], 4294963200  ;;  %v2090_v0 = vld [vmem:[#allocation4 + $0xe0] sm:$0xf]  ;;  %v2922_v1 = vld [vmem:[#allocation4 + $0xec] sm:$0xf0] }
  0x14   :  { %v2218_v2 = vld [vmem:[#allocation4 + $0x1e0] sm:$0xf]  ;;  %v2091_v3 = vor.u32 %v2922_v1, %v2090_v0  ;;  %v2954_v4 = vld [vmem:[#allocation4 + $0x1ec] sm:$0xf0]  ;;  %vm1280_vm0 = vcmask 130048  }
  0x15   :  { %v2346_v5 = vld [vmem:[#allocation4 + $0x2e0] sm:$0xf]  ;;  %v2986_v6 = vld [vmem:[#allocation4 + $0x2ec] sm:$0xf0]  ;;  %v2219_v7 = vor.u32 %v2954_v4, %v2218_v2 }
  0x16   :  { %v2347_v8 = vor.u32 %v2986_v6, %v2346_v5  ;;  %v2474_v9 = vld [vmem:[#allocation4 + $0x3e0] sm:$0xf]  ;;  %v3018_v10 = vld [vmem:[#allocation4 + $0x3ec] sm:$0xf0]  ;;  %1284 = vmatpush.bf16.msra.mxu0 %v2091_v3 }
  0x17   :  { %v2074_v11 = vld [vmem:[#allocation4 + $0xc0] sm:$0xf]  ;;  %v2475_v12 = vor.u32 %v3018_v10, %v2474_v9  ;;  %v2918_v13 = vld [vmem:[#allocation4 + $0xcc] sm:$0xf0]  ;;  %1297 = vmatpush.bf16.msra.mxu1 %v2219_v7 }
  0x18   :  { %v2202_v14 = vld [vmem:[#allocation4 + $0x1c0] sm:$0xf]  ;;  %v2950_v15 = vld [vmem:[#allocation4 + $0x1cc] sm:$0xf0]  ;;  %1310 = vmatpush.bf16.msra.mxu2 %v2347_v8  ;;  %v2075_v16 = vor.u32 %v2918_v13, %v2074_v11 }
  0x19   :  { %v2203_v17 = vor.u32 %v2950_v15, %v2202_v14  ;;  %v2330_v18 = vld [vmem:[#allocation4 + $0x2c0] sm:$0xf]  ;;  %v2982_v19 = vld [vmem:[#allocation4 + $0x2cc] sm:$0xf0]  ;;  %1323 = vmatpush.bf16.msra.mxu3 %v2475_v12 }
  0x1a   :  { %v2458_v20 = vld [vmem:[#allocation4 + $0x3c0] sm:$0xf]  ;;  %v2331_v21 = vor.u32 %v2982_v19, %v2330_v18  ;;  %v3014_v22 = vld [vmem:[#allocation4 + $0x3cc] sm:$0xf0]  ;;  %1285 = vmatpush.bf16.msra.mxu0 %v2075_v16 }
  0x1b   :  { %v2058_v23 = vld [vmem:[#allocation4 + $0xa0] sm:$0xf]  ;;  %v2914_v24 = vld [vmem:[#allocation4 + $0xac] sm:$0xf0]  ;;  %v2459_v25 = vor.u32 %v3014_v22, %v2458_v20  ;;  %1298 = vmatpush.bf16.msra.mxu1 %v2203_v17 }
  0x1c   :  { %v2186_v26 = vld [vmem:[#allocation4 + $0x1a0] sm:$0xf]  ;;  %v2946_v27 = vld [vmem:[#allocation4 + $0x1ac] sm:$0xf0]  ;;  %v2059_v29 = vor.u32 %v2914_v24, %v2058_v23  ;;  %1311 = vmatpush.bf16.msra.mxu2 %v2331_v21 }
  0x1d   :  { %v2314_v28 = vld [vmem:[#allocation4 + $0x2a0] sm:$0xf]  ;;  %v2978_v30 = vld [vmem:[#allocation4 + $0x2ac] sm:$0xf0]  ;;  %v2187_v33 = vor.u32 %v2946_v27, %v2186_v26  ;;  %1324 = vmatpush.bf16.msra.mxu3 %v2459_v25 }
  0x1e   :  { %v2442_v31 = vld [vmem:[#allocation4 + $0x3a0] sm:$0xf]  ;;  %v3010_v32 = vld [vmem:[#allocation4 + $0x3ac] sm:$0xf0]  ;;  %v2315_v34 = vor.u32 %v2978_v30, %v2314_v28  ;;  %1286 = vmatpush.bf16.msra.mxu0 %v2059_v29 }
  0x1f   :  { %v2042_v35 = vld [vmem:[#allocation4 + $0x80] sm:$0xf]  ;;  %v2910_v36 = vld [vmem:[#allocation4 + $0x8c] sm:$0xf0]  ;;  %v2443_v38 = vor.u32 %v3010_v32, %v2442_v31  ;;  %1299 = vmatpush.bf16.msra.mxu1 %v2187_v33  ;;  %v2920_v33 = vld [vmem:[#allocation4 + $0xe4] sm:$0xf] }
  0x20   :  { %v2170_v37 = vld [vmem:[#allocation4 + $0x180] sm:$0xf]  ;;  %v2942_v39 = vld [vmem:[#allocation4 + $0x18c] sm:$0xf0]  ;;  %v2043_v44 = vor.u32 %v2910_v36, %v2042_v35  ;;  %1312 = vmatpush.bf16.msra.mxu2 %v2315_v34  ;;  %v2092_v34 = vld [vmem:[#allocation4 + $0xf0] sm:$0xf0] }
  0x21   :  { %v2298_v40 = vld [vmem:[#allocation4 + $0x280] sm:$0xf]  ;;  %v2974_v41 = vld [vmem:[#allocation4 + $0x28c] sm:$0xf0]  ;;  %v2171_v45 = vor.u32 %v2942_v39, %v2170_v37  ;;  %1325 = vmatpush.bf16.msra.mxu3 %v2443_v38  ;;  %v82_v35 = vld [vmem:[#allocation2 + $0x10] sm:$0xff] }
  0x22   :  { %v2426_v42 = vld [vmem:[#allocation4 + $0x380] sm:$0xf]  ;;  %v3006_v43 = vld [vmem:[#allocation4 + $0x38c] sm:$0xf0]  ;;  %v2299_v46 = vor.u32 %v2974_v41, %v2298_v40  ;;  %1287 = vmatpush.bf16.msra.mxu0 %v2043_v44  ;;  %v80_v40 = vld [vmem:[#allocation2] sm:$0xff] }
  0x23   :  { %v2026_v47 = vld [vmem:[#allocation4 + $0x60] sm:$0xf]  ;;  %v2906_v48 = vld [vmem:[#allocation4 + $0x6c] sm:$0xf0]  ;;  %v2427_v50 = vor.u32 %v3006_v43, %v2426_v42  ;;  %1300 = vmatpush.bf16.msra.mxu1 %v2171_v45  ;;  %v2952_v43 = vld [vmem:[#allocation4 + $0x1e4] sm:$0xf] }
  0x24   :  { %v2154_v49 = vld [vmem:[#allocation4 + $0x160] sm:$0xf]  ;;  %v2938_v51 = vld [vmem:[#allocation4 + $0x16c] sm:$0xf0]  ;;  %v2027_v56 = vor.u32 %v2906_v48, %v2026_v47  ;;  %1313 = vmatpush.bf16.msra.mxu2 %v2299_v46  ;;  %v2220_v44 = vld [vmem:[#allocation4 + $0x1f0] sm:$0xf0]  ;;  %v2095_v47 = vor.u32 %v2920_v33, %v2092_v34 }
  0x25   :  { %v2282_v52 = vld [vmem:[#allocation4 + $0x260] sm:$0xf]  ;;  %v2970_v53 = vld [vmem:[#allocation4 + $0x26c] sm:$0xf0]  ;;  %v2155_v57 = vor.u32 %v2938_v51, %v2154_v49  ;;  %1326 = vmatpush.bf16.msra.mxu3 %v2427_v50  ;;  %v3281_v51 = vpack.c.bf16 %v82_v35, %v82_v35  ;;  %v2936_v35 = vld [vmem:[#allocation4 + $0x164] sm:$0xf] }
  0x26   :  { %v2410_v54 = vld [vmem:[#allocation4 + $0x360] sm:$0xf]  ;;  %v3002_v55 = vld [vmem:[#allocation4 + $0x36c] sm:$0xf0]  ;;  %v2283_v58 = vor.u32 %v2970_v53, %v2282_v52  ;;  %1288 = vmatpush.bf16.msra.mxu0 %v2027_v56  ;;  %v2916_v53 = vld [vmem:[#allocation4 + $0xc4] sm:$0xf] }
  0x27   :  { %v2010_v59 = vld [vmem:[#allocation4 + $0x40] sm:$0xf]  ;;  %v2902_v60 = vld [vmem:[#allocation4 + $0x4c] sm:$0xf0]  ;;  %v2411_v62 = vor.u32 %v3002_v55, %v2410_v54  ;;  %1301 = vmatpush.bf16.msra.mxu1 %v2155_v57  ;;  %v2076_v54 = vld [vmem:[#allocation4 + $0xd0] sm:$0xf0]  ;;  %v3283_v55 = vpack.c.bf16 %v80_v40, %v80_v40 }
  0x28   :  { %v2138_v61 = vld [vmem:[#allocation4 + $0x140] sm:$0xf]  ;;  %v2934_v63 = vld [vmem:[#allocation4 + $0x14c] sm:$0xf0]  ;;  %v2011_v4 = vor.u32 %v2902_v60, %v2010_v59  ;;  %1314 = vmatpush.bf16.msra.mxu2 %v2283_v58  ;;  %v2223_v59 = vor.u32 %v2952_v43, %v2220_v44  ;;  %v2900_v43 = vld [vmem:[#allocation4 + $0x44] sm:$0xf] }
  0x29   :  { %v2266_v0 = vld [vmem:[#allocation4 + $0x240] sm:$0xf]  ;;  %v2966_v1 = vld [vmem:[#allocation4 + $0x24c] sm:$0xf0]  ;;  %v2139_v5 = vor.u32 %v2934_v63, %v2138_v61  ;;  %1327 = vmatpush.bf16.msra.mxu3 %v2411_v62  ;;  %v2948_v61 = vld [vmem:[#allocation4 + $0x1c4] sm:$0xf] }
  0x2a   :  { %v2394_v2 = vld [vmem:[#allocation4 + $0x340] sm:$0xf]  ;;  %v2998_v3 = vld [vmem:[#allocation4 + $0x34c] sm:$0xf0]  ;;  %v2267_v6 = vor.u32 %v2966_v1, %v2266_v0  ;;  %1289 = vmatpush.bf16.msra.mxu0 %v2011_v4  ;;  %v2204_v62 = vld [vmem:[#allocation4 + $0x1d0] sm:$0xf0]  ;;  %v2079_v0 = vor.u32 %v2916_v53, %v2076_v54 }
  0x2b   :  { %v1994_v7 = vld [vmem:[#allocation4 + $0x20] sm:$0xf]  ;;  %v2898_v8 = vld [vmem:[#allocation4 + $0x2c] sm:$0xf0]  ;;  %v2395_v10 = vor.u32 %v2998_v3, %v2394_v2  ;;  %1302 = vmatpush.bf16.msra.mxu1 %v2139_v5  ;;  %v2912_v5 = vld [vmem:[#allocation4 + $0xa4] sm:$0xf] }
  0x2c   :  { %v2122_v9 = vld [vmem:[#allocation4 + $0x120] sm:$0xf]  ;;  %v2930_v11 = vld [vmem:[#allocation4 + $0x12c] sm:$0xf0]  ;;  %v1995_v16 = vor.u32 %v2898_v8, %v1994_v7  ;;  %1315 = vmatpush.bf16.msra.mxu2 %v2267_v6  ;;  %v2060_v6 = vld [vmem:[#allocation4 + $0xb0] sm:$0xf0]  ;;  %v2207_v8 = vor.u32 %v2948_v61, %v2204_v62 }
  0x2d   :  { %v2250_v12 = vld [vmem:[#allocation4 + $0x220] sm:$0xf]  ;;  %v2962_v13 = vld [vmem:[#allocation4 + $0x22c] sm:$0xf0]  ;;  %v2123_v20 = vor.u32 %v2930_v11, %v2122_v9  ;;  %1328 = vmatpush.bf16.msra.mxu3 %v2395_v10  ;;  %v2944_v10 = vld [vmem:[#allocation4 + $0x1a4] sm:$0xf] }
  0x2e   :  { %v2378_v14 = vld [vmem:[#allocation4 + $0x320] sm:$0xf]  ;;  %v2994_v15 = vld [vmem:[#allocation4 + $0x32c] sm:$0xf0]  ;;  %v2251_v21 = vor.u32 %v2962_v13, %v2250_v12  ;;  %1290 = vmatpush.bf16.msra.mxu0 %v1995_v16  ;;  %v2188_v11 = vld [vmem:[#allocation4 + $0x1b0] sm:$0xf0]  ;;  %v2063_v13 = vor.u32 %v2912_v5, %v2060_v6 }
  0x2f   :  { %v1978_v17 = vld [vmem:[#allocation4] sm:$0xf]  ;;  %v2894_v18 = vld [vmem:[#allocation4 + $0xc] sm:$0xf0]  ;;  %v2379_v25 = vor.u32 %v2994_v15, %v2378_v14  ;;  %1303 = vmatpush.bf16.msra.mxu1 %v2123_v20  ;;  %v2191_v20 = vor.u32 %v2944_v10, %v2188_v11  ;;  %v2012_v44 = vld [vmem:[#allocation4 + $0x50] sm:$0xf0] }
  0x30   :  { %v2106_v19 = vld [vmem:[#allocation4 + $0x100] sm:$0xf]  ;;  %v2926_v22 = vld [vmem:[#allocation4 + $0x10c] sm:$0xf0]  ;;  %v1979_v32 = vor.u32 %v2894_v18, %v1978_v17  ;;  %1316 = vmatpush.bf16.msra.mxu2 %v2251_v21  ;;  %v2908_v18 = vld [vmem:[#allocation4 + $0x84] sm:$0xf] }
  0x31   :  { %v2234_v23 = vld [vmem:[#allocation4 + $0x200] sm:$0xf]  ;;  %v2958_v24 = vld [vmem:[#allocation4 + $0x20c] sm:$0xf0]  ;;  %v2107_v36 = vor.u32 %v2926_v22, %v2106_v19  ;;  %1329 = vmatpush.bf16.msra.mxu3 %v2379_v25  ;;  %v2044_v19 = vld [vmem:[#allocation4 + $0x90] sm:$0xf0] }
  0x32   :  { %v2362_v26 = vld [vmem:[#allocation4 + $0x300] sm:$0xf]  ;;  %v2990_v27 = vld [vmem:[#allocation4 + $0x30c] sm:$0xf0]  ;;  %v2235_v37 = vor.u32 %v2958_v24, %v2234_v23  ;;  %1291 = vmatpush.bf16.msra.mxu0 %v1979_v32  ;;  %v2940_v22 = vld [vmem:[#allocation4 + $0x184] sm:$0xf]  ;;  %v2047_v25 = vor.u32 %v2908_v18, %v2044_v19 }
  0x33   :  { %v2602_v28 = vld [vmem:[#allocation4 + $0x4e0] sm:$0xf]  ;;  %v3050_v29 = vld [vmem:[#allocation4 + $0x4ec] sm:$0xf0]  ;;  %v2363_v41 = vor.u32 %v2990_v27, %v2362_v26  ;;  %1304 = vmatpush.bf16.msra.mxu1 %v2107_v36  ;;  %v2172_v23 = vld [vmem:[#allocation4 + $0x190] sm:$0xf0] }
  0x34   :  { %v2730_v30 = vld [vmem:[#allocation4 + $0x5e0] sm:$0xf]  ;;  %v3082_v31 = vld [vmem:[#allocation4 + $0x5ec] sm:$0xf0]  ;;  %v2603_v42 = vor.u32 %v3050_v29, %v2602_v28  ;;  %1317 = vmatpush.bf16.msra.mxu2 %v2235_v37  ;;  %v86_v32 = vld [vmem:[#allocation2 + $0x30] sm:$0xff]  ;;  %v2175_v33 = vor.u32 %v2940_v22, %v2172_v23 }
  0x35   :  { %v2746_v38 = vld [vmem:[#allocation4 + $0x600] sm:$0xf]  ;;  %v3086_v39 = vld [vmem:[#allocation4 + $0x60c] sm:$0xf0]  ;;  %v2731_v46 = vor.u32 %v3082_v31, %v2730_v30  ;;  %1330 = vmatpush.bf16.msra.mxu3 %v2363_v41  ;;  %1292 = vmatmul.bf16.vlgmr.msra.gmra.mxu0 %v3283_v55  ;;  %v2904_v30 = vld [vmem:[#allocation4 + $0x64] sm:$0xf] }
  0x36   :  { %v83_v45 = vld [vmem:[#allocation2 + $0x18] sm:$0xff]  ;;  %v3046_v49 = vld [vmem:[#allocation4 + $0x4cc] sm:$0xf0]  ;;  %v2747_v56 = vor.u32 %v3086_v39, %v2746_v38  ;;  %1336 = vmatpush.bf16.msrb.mxu0 %v2603_v42  ;;  %v2028_v31 = vld [vmem:[#allocation4 + $0x70] sm:$0xf0] }
  0x37   :  { %v2586_v48 = vld [vmem:[#allocation4 + $0x4c0] sm:$0xf]  ;;  %v3078_v52 = vld [vmem:[#allocation4 + $0x5cc] sm:$0xf0]  ;;  %v3285_v57 = vpack.c.bf16 %v83_v45, %v83_v45  ;;  %1349 = vmatpush.bf16.msrb.mxu1 %v2731_v46  ;;  %1318 = vmatmul.bf16.vlgmr.msra.gmra.mxu2 %v3281_v51  ;;  %v2156_v36 = vld [vmem:[#allocation4 + $0x170] sm:$0xf0]  ;;  %v2031_v38 = vor.u32 %v2904_v30, %v2028_v31  ;;  %v3293_v45 = vpack.c.bf16 %v86_v32, %v86_v32 }
  0x38   :  { %v2714_v50 = vld [vmem:[#allocation4 + $0x5c0] sm:$0xf]  ;;  %v81_v58 = vld [vmem:[#allocation2 + $0x8] sm:$0xff]  ;;  %v2587_v60 = vor.u32 %v3046_v49, %v2586_v48  ;;  %1369 = vmatpush.bf16.msrb.mxu2 %v2747_v56  ;;  %v2159_v46 = vor.u32 %v2936_v35, %v2156_v36  ;;  %v2932_v48 = vld [vmem:[#allocation4 + $0x144] sm:$0xf] }
  0x39   :  { %1375 = vmatpush.bf16.msrb.mxu3 %v2095_v47  ;;  %v2715_v63 = vor.u32 %v3078_v52, %v2714_v50  ;;  %v2570_v1 = vld [vmem:[#allocation4 + $0x4a0] sm:$0xf]  ;;  %v3042_v2 = vld [vmem:[#allocation4 + $0x4ac] sm:$0xf0]  ;;  %v3289_v7 = vpack.c.bf16 %v81_v58, %v81_v58  ;;  %v2140_v49 = vld [vmem:[#allocation4 + $0x150] sm:$0xf0]  ;;  %v2015_v52 = vor.u32 %v2900_v43, %v2012_v44 }
  0x3a   :  { %v2698_v3 = vld [vmem:[#allocation4 + $0x5a0] sm:$0xf]  ;;  %v3074_v4 = vld [vmem:[#allocation4 + $0x5ac] sm:$0xf0]  ;;  %1331 = vmatmul.bf16.vlgmr.msra.gmra.mxu3 %v3285_v57  ;;  %1337 = vmatpush.bf16.msrb.mxu0 %v2587_v60  ;;  %v2571_v9 = vor.u32 %v3042_v2, %v2570_v1  ;;  %v1996_v60 = vld [vmem:[#allocation4 + $0x30] sm:$0xf0]  ;;  %v2143_v61 = vor.u32 %v2932_v48, %v2140_v49 }
  0x3b   :  { %1350 = vmatpush.bf16.msrb.mxu1 %v2715_v63  ;;  %v2699_v12 = vor.u32 %v3074_v4, %v2698_v3  ;;  %v2554_v14 = vld [vmem:[#allocation4 + $0x480] sm:$0xf]  ;;  %v3038_v15 = vld [vmem:[#allocation4 + $0x48c] sm:$0xf0]  ;;  %v2928_v63 = vld [vmem:[#allocation4 + $0x124] sm:$0xf] }
  0x3c   :  { %1388 = vmatpush.bf16.msra.mxu2 %v2223_v59  ;;  %v2682_v16 = vld [vmem:[#allocation4 + $0x580] sm:$0xf]  ;;  %1305 = vmatmul.bf16.vlgmr.msra.gmra.mxu1 %v3289_v7  ;;  %v3070_v17 = vld [vmem:[#allocation4 + $0x58c] sm:$0xf0]  ;;  %v2555_v21 = vor.u32 %v3038_v15, %v2554_v14  ;;  %v2896_v59 = vld [vmem:[#allocation4 + $0x24] sm:$0xf] }
  0x3d   :  { %1376 = vmatpush.bf16.msrb.mxu3 %v2079_v0  ;;  %v2683_v24 = vor.u32 %v3070_v17, %v2682_v16  ;;  %v2538_v26 = vld [vmem:[#allocation4 + $0x460] sm:$0xf]  ;;  %v3034_v27 = vld [vmem:[#allocation4 + $0x46c] sm:$0xf0]  ;;  %v2124_v0 = vld [vmem:[#allocation4 + $0x130] sm:$0xf0]  ;;  %v1999_v3 = vor.u32 %v2896_v59, %v1996_v60 }
  0x3e   :  { %1338 = vmatpush.bf16.msrb.mxu0 %v2571_v9  ;;  %v2666_v28 = vld [vmem:[#allocation4 + $0x560] sm:$0xf]  ;;  %v3066_v29 = vld [vmem:[#allocation4 + $0x56c] sm:$0xf0]  ;;  %v2539_v34 = vor.u32 %v3034_v27, %v2538_v26  ;;  %v1980_v9 = vld [vmem:[#allocation4 + $0x10] sm:$0xf0]  ;;  %v2127_v14 = vor.u32 %v2928_v63, %v2124_v0 }
  0x3f   :  { %1351 = vmatpush.bf16.msrb.mxu1 %v2699_v12  ;;  %v2667_v37 = vor.u32 %v3066_v29, %v2666_v28  ;;  %v2522_v39 = vld [vmem:[#allocation4 + $0x440] sm:$0xf]  ;;  %v3030_v40 = vld [vmem:[#allocation4 + $0x44c] sm:$0xf0]  ;;  %v2984_v10 = vld [vmem:[#allocation4 + $0x2e4] sm:$0xf] }
  0x40   :  { %1389 = vmatpush.bf16.msra.mxu2 %v2207_v8  ;;  %v2650_v41 = vld [vmem:[#allocation4 + $0x540] sm:$0xf]  ;;  %v3062_v42 = vld [vmem:[#allocation4 + $0x54c] sm:$0xf0]  ;;  %v2523_v47 = vor.u32 %v3030_v40, %v2522_v39  ;;  %v2892_v8 = vld [vmem:[#allocation4 + $0x4] sm:$0xf] }
  0x41   :  { %1377 = vmatpush.bf16.msrb.mxu3 %v2063_v13  ;;  %v2651_v50 = vor.u32 %v3062_v42, %v2650_v41  ;;  %v2506_v53 = vld [vmem:[#allocation4 + $0x420] sm:$0xf]  ;;  %v3026_v54 = vld [vmem:[#allocation4 + $0x42c] sm:$0xf0]  ;;  %v2348_v11 = vld [vmem:[#allocation4 + $0x2f0] sm:$0xf0] }
  0x42   :  { %1339 = vmatpush.bf16.msrb.mxu0 %v2555_v21  ;;  %v2634_v56 = vld [vmem:[#allocation4 + $0x520] sm:$0xf]  ;;  %v3058_v58 = vld [vmem:[#allocation4 + $0x52c] sm:$0xf0]  ;;  %v2507_v62 = vor.u32 %v3026_v54, %v2506_v53  ;;  %v3016_v12 = vld [vmem:[#allocation4 + $0x3e4] sm:$0xf] }
  0x43   :  { %1352 = vmatpush.bf16.msrb.mxu1 %v2683_v24  ;;  %v2490_v1 = vld [vmem:[#allocation4 + $0x400] sm:$0xf]  ;;  %v2635_v2 = vor.u32 %v3058_v58, %v2634_v56  ;;  %v3022_v4 = vld [vmem:[#allocation4 + $0x40c] sm:$0xf0]  ;;  %v2476_v13 = vld [vmem:[#allocation4 + $0x3f0] sm:$0xf0]  ;;  %v2351_v24 = vor.u32 %v2984_v10, %v2348_v11 }
  0x44   :  { %1390 = vmatpush.bf16.msra.mxu2 %v2191_v20  ;;  %v2618_v5 = vld [vmem:[#allocation4 + $0x500] sm:$0xf]  ;;  %v3054_v6 = vld [vmem:[#allocation4 + $0x50c] sm:$0xf0]  ;;  %v2491_v15 = vor.u32 %v3022_v4, %v2490_v1  ;;  %v3048_v16 = vld [vmem:[#allocation4 + $0x4e4] sm:$0xf]  ;;  %v1983_v20 = vor.u32 %v2892_v8, %v1980_v9 }
  0x45   :  { %1378 = vmatpush.bf16.msrb.mxu3 %v2047_v25  ;;  %v2604_v17 = vld [vmem:[#allocation4 + $0x4f0] sm:$0xf0]  ;;  %v84_v18 = vld [vmem:[#allocation2 + $0x20] sm:$0xff]  ;;  %v2619_v19 = vor.u32 %v3054_v6, %v2618_v5  ;;  %v2924_v21 = vld [vmem:[#allocation4 + $0x104] sm:$0xf]  ;;  %v2479_v25 = vor.u32 %v3016_v12, %v2476_v13 }
  0x46   :  { %1340 = vmatpush.bf16.msrb.mxu0 %v2539_v34  ;;  %v2108_v22 = vld [vmem:[#allocation4 + $0x110] sm:$0xf0]  ;;  %v3080_v26 = vld [vmem:[#allocation4 + $0x5e4] sm:$0xf]  ;;  %v2607_v29 = vor.u32 %v3048_v16, %v2604_v17  ;;  %v3297_v30 = vpack.c.bf16 %v84_v18, %v84_v18 }
  0x47   :  { %1353 = vmatpush.bf16.msrb.mxu1 %v2667_v37  ;;  %2760 = vmatmul.msk.bf16.vlgmr.msrb.gmra.mxu2 %vm1280_vm0, %v3293_v45  ;;  %v85_v23 = vld [vmem:[#allocation2 + $0x28] sm:$0xff]  ;;  %v2980_v28 = vld [vmem:[#allocation4 + $0x2c4] sm:$0xf]  ;;  %v2111_v34 = vor.u32 %v2924_v21, %v2108_v22 }
  0x48   :  { %1391 = vmatpush.bf16.msra.mxu2 %v2175_v33  ;;  %v2732_v27 = vld [vmem:[#allocation4 + $0x5f0] sm:$0xf0]  ;;  %v3012_v32 = vld [vmem:[#allocation4 + $0x3c4] sm:$0xf]  ;;  %v3299_v35 = vpack.c.bf16 %v85_v23, %v85_v23 }
  0x49   :  { %1379 = vmatpush.bf16.msrb.mxu3 %v2031_v38  ;;  %v2332_v31 = vld [vmem:[#allocation4 + $0x2d0] sm:$0xf0]  ;;  %v3044_v36 = vld [vmem:[#allocation4 + $0x4c4] sm:$0xf]  ;;  %v2735_v38 = vor.u32 %v3080_v26, %v2732_v27 }
  0x4a   :  { %1341 = vmatpush.bf16.msrb.mxu0 %v2523_v47  ;;  %v2460_v33 = vld [vmem:[#allocation4 + $0x3d0] sm:$0xf0]  ;;  %v2335_v39 = vor.u32 %v2980_v28, %v2332_v31  ;;  %v3076_v41 = vld [vmem:[#allocation4 + $0x5c4] sm:$0xf] }
  0x4b   :  { %1354 = vmatpush.bf16.msrb.mxu1 %v2651_v50  ;;  %v2588_v37 = vld [vmem:[#allocation4 + $0x4d0] sm:$0xf0]  ;;  %v2463_v40 = vor.u32 %v3012_v32, %v2460_v33  ;;  %v2976_v43 = vld [vmem:[#allocation4 + $0x2a4] sm:$0xf] }
  0x4c   :  { %1392 = vmatpush.bf16.msra.mxu2 %v2159_v46  ;;  %v2716_v42 = vld [vmem:[#allocation4 + $0x5d0] sm:$0xf0]  ;;  %v2591_v44 = vor.u32 %v3044_v36, %v2588_v37  ;;  %v3008_v47 = vld [vmem:[#allocation4 + $0x3a4] sm:$0xf] }
  0x4d   :  { %1380 = vmatpush.bf16.msrb.mxu3 %v2015_v52  ;;  %v2316_v46 = vld [vmem:[#allocation4 + $0x2b0] sm:$0xf0]  ;;  %v3040_v49 = vld [vmem:[#allocation4 + $0x4a4] sm:$0xf]  ;;  %v2719_v52 = vor.u32 %v3076_v41, %v2716_v42 }
  0x4e   :  { %1342 = vmatpush.bf16.msrb.mxu0 %v2507_v62  ;;  %v2444_v48 = vld [vmem:[#allocation4 + $0x3b0] sm:$0xf0]  ;;  %v2319_v53 = vor.u32 %v2976_v43, %v2316_v46  ;;  %v3072_v56 = vld [vmem:[#allocation4 + $0x5a4] sm:$0xf] }
  0x4f   :  { %1355 = vmatpush.bf16.msrb.mxu1 %v2635_v2  ;;  %v2572_v50 = vld [vmem:[#allocation4 + $0x4b0] sm:$0xf0]  ;;  %v2447_v54 = vor.u32 %v3008_v47, %v2444_v48  ;;  %v2972_v59 = vld [vmem:[#allocation4 + $0x284] sm:$0xf] }
  0x50   :  { %1393 = vmatpush.bf16.msra.mxu2 %v2143_v61  ;;  %v2700_v58 = vld [vmem:[#allocation4 + $0x5b0] sm:$0xf0]  ;;  %v2575_v60 = vor.u32 %v3040_v49, %v2572_v50  ;;  %v3004_v62 = vld [vmem:[#allocation4 + $0x384] sm:$0xf] }
  0x51   :  { %1381 = vmatpush.bf16.msrb.mxu3 %v1999_v3  ;;  %v2300_v61 = vld [vmem:[#allocation4 + $0x290] sm:$0xf0]  ;;  %v3036_v0 = vld [vmem:[#allocation4 + $0x484] sm:$0xf]  ;;  %v2703_v2 = vor.u32 %v3072_v56, %v2700_v58  ;;  %v2098_v56 = vld [vmem:[#allocation4 + $0xe8] sm:$0xf] }
  0x52   :  { %1343 = vmatpush.bf16.msrb.mxu0 %v2491_v15  ;;  %v2428_v63 = vld [vmem:[#allocation4 + $0x390] sm:$0xf0]  ;;  %v2303_v3 = vor.u32 %v2972_v59, %v2300_v61  ;;  %v3068_v5 = vld [vmem:[#allocation4 + $0x584] sm:$0xf]  ;;  %v2923_v58 = vld [vmem:[#allocation4 + $0xf4] sm:$0xf0] }
  0x53   :  { %1356 = vmatpush.bf16.msrb.mxu1 %v2619_v19  ;;  %v2556_v1 = vld [vmem:[#allocation4 + $0x490] sm:$0xf0]  ;;  %v2431_v4 = vor.u32 %v3004_v62, %v2428_v63  ;;  %v2968_v8 = vld [vmem:[#allocation4 + $0x264] sm:$0xf]  ;;  %v2354_v62 = vld [vmem:[#allocation4 + $0x2e8] sm:$0xf] }
  0x54   :  { %1394 = vmatpush.bf16.msra.mxu2 %v2127_v14  ;;  %v2684_v6 = vld [vmem:[#allocation4 + $0x590] sm:$0xf0]  ;;  %v2559_v9 = vor.u32 %v3036_v0, %v2556_v1  ;;  %v3000_v11 = vld [vmem:[#allocation4 + $0x364] sm:$0xf]  ;;  %v2987_v63 = vld [vmem:[#allocation4 + $0x2f4] sm:$0xf0] }
  0x55   :  { %1382 = vmatpush.bf16.msrb.mxu3 %v1983_v20  ;;  %1344 = vmatmul.bf16.vlgmr.msrb.gmra.mxu0 %v3297_v30  ;;  %v2284_v10 = vld [vmem:[#allocation4 + $0x270] sm:$0xf0]  ;;  %v3032_v13 = vld [vmem:[#allocation4 + $0x464] sm:$0xf]  ;;  %v2687_v15 = vor.u32 %v3068_v5, %v2684_v6  ;;  %v2099_v5 = vor.u32 %v2923_v58, %v2098_v56  ;;  %v2482_v6 = vld [vmem:[#allocation4 + $0x3e8] sm:$0xf] }
  0x56   :  { %1401 = vmatpush.bf16.msra.mxu0 %v2351_v24  ;;  %1357 = vmatmul.bf16.vlgmr.msrb.gmra.mxu1 %v3299_v35  ;;  %v2412_v12 = vld [vmem:[#allocation4 + $0x370] sm:$0xf0]  ;;  %v2287_v16 = vor.u32 %v2968_v8, %v2284_v10  ;;  %v3064_v18 = vld [vmem:[#allocation4 + $0x564] sm:$0xf]  ;;  %v3019_v8 = vld [vmem:[#allocation4 + $0x3f4] sm:$0xf0] }
  0x57   :  { %1414 = vmatpush.bf16.msra.mxu1 %v2479_v25  ;;  %v2540_v14 = vld [vmem:[#allocation4 + $0x470] sm:$0xf0]  ;;  %v2415_v17 = vor.u32 %v3000_v11, %v2412_v12  ;;  %v2964_v20 = vld [vmem:[#allocation4 + $0x244] sm:$0xf]  ;;  %v2226_v10 = vld [vmem:[#allocation4 + $0x1e8] sm:$0xf]  ;;  %v2355_v12 = vor.u32 %v2987_v63, %v2354_v62 }
  0x58   :  { %1395 = vmatpush.bf16.msra.mxu2 %v2111_v34  ;;  %1383 = vmatmul.bf16.vlgmr.msrb.gmra.mxu3 %v3283_v55  ;;  %v2668_v19 = vld [vmem:[#allocation4 + $0x570] sm:$0xf0]  ;;  %v2543_v21 = vor.u32 %v3032_v13, %v2540_v14  ;;  %v2996_v23 = vld [vmem:[#allocation4 + $0x344] sm:$0xf]  ;;  %v2955_v11 = vld [vmem:[#allocation4 + $0x1f4] sm:$0xf0] }
  0x59   :  { %1427 = vmatpush.bf16.msra.mxu3 %v2607_v29  ;;  %v2268_v22 = vld [vmem:[#allocation4 + $0x250] sm:$0xf0]  ;;  %v3028_v25 = vld [vmem:[#allocation4 + $0x444] sm:$0xf]  ;;  %v2671_v27 = vor.u32 %v3064_v18, %v2668_v19  ;;  %v2082_v14 = vld [vmem:[#allocation4 + $0xc8] sm:$0xf]  ;;  %v2227_v19 = vor.u32 %v2955_v11, %v2226_v10 }
  0x5a   :  { %1402 = vmatpush.bf16.msra.mxu0 %v2335_v39  ;;  %v2396_v24 = vld [vmem:[#allocation4 + $0x350] sm:$0xf0]  ;;  %v2271_v28 = vor.u32 %v2964_v20, %v2268_v22  ;;  %v3060_v31 = vld [vmem:[#allocation4 + $0x544] sm:$0xf]  ;;  %v2983_v18 = vld [vmem:[#allocation4 + $0x2d4] sm:$0xf0] }
  0x5b   :  { %1415 = vmatpush.bf16.msra.mxu1 %v2463_v40  ;;  %1396 = vmatmul.bf16.vlgmr.msra.gmra.mxu2 %v3289_v7  ;;  %v2524_v26 = vld [vmem:[#allocation4 + $0x450] sm:$0xf0]  ;;  %v2399_v29 = vor.u32 %v2996_v23, %v2396_v24  ;;  %v2960_v33 = vld [vmem:[#allocation4 + $0x224] sm:$0xf]  ;;  %v2466_v20 = vld [vmem:[#allocation4 + $0x3c8] sm:$0xf] }
  0x5c   :  { %1440 = vmatpush.bf16.msrb.mxu2 %v2735_v38  ;;  %v2652_v32 = vld [vmem:[#allocation4 + $0x550] sm:$0xf0]  ;;  %v2527_v34 = vor.u32 %v3028_v25, %v2524_v26  ;;  %v2992_v37 = vld [vmem:[#allocation4 + $0x324] sm:$0xf]  ;;  %v2210_v23 = vld [vmem:[#allocation4 + $0x1c8] sm:$0xf] }
  0x5d   :  { %1428 = vmatpush.bf16.msra.mxu3 %v2591_v44  ;;  %v2252_v36 = vld [vmem:[#allocation4 + $0x230] sm:$0xf0]  ;;  %v3024_v39 = vld [vmem:[#allocation4 + $0x424] sm:$0xf]  ;;  %v2655_v41 = vor.u32 %v3060_v31, %v2652_v32  ;;  %v2951_v24 = vld [vmem:[#allocation4 + $0x1d4] sm:$0xf0] }
  0x5e   :  { %1403 = vmatpush.bf16.msra.mxu0 %v2319_v53  ;;  %v2380_v38 = vld [vmem:[#allocation4 + $0x330] sm:$0xf0]  ;;  %v3056_v42 = vld [vmem:[#allocation4 + $0x524] sm:$0xf]  ;;  %v2255_v46 = vor.u32 %v2960_v33, %v2252_v36  ;;  %v2066_v26 = vld [vmem:[#allocation4 + $0xa8] sm:$0xf]  ;;  %v2211_v32 = vor.u32 %v2951_v24, %v2210_v23 }
  0x5f   :  { %1416 = vmatpush.bf16.msra.mxu1 %v2447_v54  ;;  %v2508_v40 = vld [vmem:[#allocation4 + $0x430] sm:$0xf0]  ;;  %v2956_v44 = vld [vmem:[#allocation4 + $0x204] sm:$0xf]  ;;  %v2383_v47 = vor.u32 %v2992_v37, %v2380_v38  ;;  %v2979_v31 = vld [vmem:[#allocation4 + $0x2b4] sm:$0xf0] }
  0x60   :  { %1441 = vmatpush.bf16.msrb.mxu2 %v2719_v52  ;;  %v2636_v43 = vld [vmem:[#allocation4 + $0x530] sm:$0xf0]  ;;  %v2988_v49 = vld [vmem:[#allocation4 + $0x304] sm:$0xf]  ;;  %v2511_v52 = vor.u32 %v3024_v39, %v2508_v40  ;;  %v2450_v33 = vld [vmem:[#allocation4 + $0x3a8] sm:$0xf] }
  0x61   :  { %1429 = vmatpush.bf16.msra.mxu3 %v2575_v60  ;;  %v2236_v48 = vld [vmem:[#allocation4 + $0x210] sm:$0xf0]  ;;  %v3020_v53 = vld [vmem:[#allocation4 + $0x404] sm:$0xf]  ;;  %v2639_v60 = vor.u32 %v3056_v42, %v2636_v43  ;;  %v2194_v37 = vld [vmem:[#allocation4 + $0x1a8] sm:$0xf] }
  0x62   :  { %1404 = vmatpush.bf16.msra.mxu0 %v2303_v3  ;;  %v2364_v50 = vld [vmem:[#allocation4 + $0x310] sm:$0xf0]  ;;  %v3084_v59 = vld [vmem:[#allocation4 + $0x604] sm:$0xf]  ;;  %v2239_v0 = vor.u32 %v2956_v44, %v2236_v48  ;;  %v2947_v38 = vld [vmem:[#allocation4 + $0x1b4] sm:$0xf0] }
  0x63   :  { %1417 = vmatpush.bf16.msra.mxu1 %v2431_v4  ;;  %v2492_v54 = vld [vmem:[#allocation4 + $0x410] sm:$0xf0]  ;;  %v2367_v1 = vor.u32 %v2988_v49, %v2364_v50  ;;  %v2050_v40 = vld [vmem:[#allocation4 + $0x88] sm:$0xf]  ;;  %v2975_v44 = vld [vmem:[#allocation4 + $0x294] sm:$0xf0] }
  0x64   :  { %1442 = vmatpush.bf16.msrb.mxu2 %v2703_v2  ;;  %v2748_v61 = vld [vmem:[#allocation4 + $0x610] sm:$0xf0]  ;;  %v3052_v2 = vld [vmem:[#allocation4 + $0x504] sm:$0xf]  ;;  %v2495_v4 = vor.u32 %v3020_v53, %v2492_v54  ;;  %v2306_v43 = vld [vmem:[#allocation4 + $0x288] sm:$0xf] }
  0x65   :  { %1430 = vmatpush.bf16.msra.mxu3 %v2559_v9  ;;  %v2620_v3 = vld [vmem:[#allocation4 + $0x510] sm:$0xf0]  ;;  %v2751_v9 = vor.u32 %v3084_v59, %v2748_v61  ;;  %v3007_v48 = vld [vmem:[#allocation4 + $0x394] sm:$0xf0]  ;;  %v2178_v50 = vld [vmem:[#allocation4 + $0x188] sm:$0xf]  ;;  %v2307_v53 = vor.u32 %v2975_v44, %v2306_v43 }
  0x66   :  { %1405 = vmatpush.bf16.msra.mxu0 %v2287_v16  ;;  %v2623_v13 = vor.u32 %v3052_v2, %v2620_v3  ;;  %v2483_v16 = vor.u32 %v3019_v8, %v2482_v6  ;;  %v2034_v54 = vld [vmem:[#allocation4 + $0x68] sm:$0xf]  ;;  %v2907_v56 = vld [vmem:[#allocation4 + $0x74] sm:$0xf0] }
  0x67   :  { %1418 = vmatpush.bf16.msra.mxu1 %v2415_v17  ;;  %v2338_v17 = vld [vmem:[#allocation4 + $0x2c8] sm:$0xf]  ;;  %v3003_v63 = vld [vmem:[#allocation4 + $0x374] sm:$0xf0] }
  0x68   :  { %1443 = vmatpush.bf16.msrb.mxu2 %v2687_v15  ;;  %v2919_v15 = vld [vmem:[#allocation4 + $0xd4] sm:$0xf0]  ;;  %v2339_v25 = vor.u32 %v2983_v18, %v2338_v17  ;;  %v2290_v59 = vld [vmem:[#allocation4 + $0x268] sm:$0xf] }
  0x69   :  { %1431 = vmatpush.bf16.msra.mxu3 %v2543_v21  ;;  %v3015_v21 = vld [vmem:[#allocation4 + $0x3d4] sm:$0xf0]  ;;  %v2083_v22 = vor.u32 %v2919_v15, %v2082_v14  ;;  %v2418_v62 = vld [vmem:[#allocation4 + $0x368] sm:$0xf] }
  0x6a   :  { %1406 = vmatpush.bf16.msra.mxu0 %v2271_v28  ;;  %v2467_v28 = vor.u32 %v3015_v21, %v2466_v20  ;;  %v2939_v2 = vld [vmem:[#allocation4 + $0x174] sm:$0xf0]  ;;  %v2419_v6 = vor.u32 %v3003_v63, %v2418_v62  ;;  %v2274_v8 = vld [vmem:[#allocation4 + $0x248] sm:$0xf] }
  0x6b   :  { %1419 = vmatpush.bf16.msra.mxu1 %v2399_v29  ;;  %v2322_v29 = vld [vmem:[#allocation4 + $0x2a8] sm:$0xf]  ;;  %v2935_v15 = vld [vmem:[#allocation4 + $0x154] sm:$0xf0] }
  0x6c   :  { %1444 = vmatpush.bf16.msrb.mxu2 %v2671_v27  ;;  %v2915_v27 = vld [vmem:[#allocation4 + $0xb4] sm:$0xf0]  ;;  %v2323_v39 = vor.u32 %v2979_v31, %v2322_v29  ;;  %v2402_v11 = vld [vmem:[#allocation4 + $0x348] sm:$0xf] }
  0x6d   :  { %1432 = vmatpush.bf16.msra.mxu3 %v2527_v34  ;;  %v3011_v34 = vld [vmem:[#allocation4 + $0x3b4] sm:$0xf0]  ;;  %v2067_v36 = vor.u32 %v2915_v27, %v2066_v26  ;;  %v2146_v14 = vld [vmem:[#allocation4 + $0x148] sm:$0xf] }
  0x6e   :  { %1407 = vmatpush.bf16.msra.mxu0 %v2255_v46  ;;  %v2451_v42 = vor.u32 %v3011_v34, %v2450_v33  ;;  %v2195_v46 = vor.u32 %v2947_v38, %v2194_v37  ;;  %v2002_v17 = vld [vmem:[#allocation4 + $0x28] sm:$0xf]  ;;  %v2899_v18 = vld [vmem:[#allocation4 + $0x34] sm:$0xf0] }
  0x6f   :  { %1420 = vmatpush.bf16.msra.mxu1 %v2383_v47  ;;  %v2434_v47 = vld [vmem:[#allocation4 + $0x388] sm:$0xf]  ;;  %v2963_v21 = vld [vmem:[#allocation4 + $0x234] sm:$0xf0] }
  0x70   :  { %1445 = vmatpush.bf16.msrb.mxu2 %v2655_v41  ;;  %v2911_v41 = vld [vmem:[#allocation4 + $0x94] sm:$0xf0]  ;;  %v2435_v58 = vor.u32 %v3007_v48, %v2434_v47  ;;  %v2258_v20 = vld [vmem:[#allocation4 + $0x228] sm:$0xf]  ;;  %v2921_v47 = vld [vmem:[#allocation4 + $0xec] sm:$0xf] }
  0x71   :  { %1433 = vmatpush.bf16.msra.mxu3 %v2511_v52  ;;  %v2051_v49 = vor.u32 %v2911_v41, %v2050_v40  ;;  %v2943_v52 = vld [vmem:[#allocation4 + $0x194] sm:$0xf0]  ;;  %v2386_v23 = vld [vmem:[#allocation4 + $0x328] sm:$0xf]  ;;  %v2259_v29 = vor.u32 %v2963_v21, %v2258_v20  ;;  %v2100_v48 = vld [vmem:[#allocation4 + $0xf8] sm:$0xf0] }
  0x72   :  { %1408 = vmatpush.bf16.msra.mxu0 %v2239_v0  ;;  %v2179_v61 = vor.u32 %v2943_v52, %v2178_v50  ;;  %v2035_v0 = vor.u32 %v2907_v56, %v2034_v54  ;;  %v2995_v24 = vld [vmem:[#allocation4 + $0x334] sm:$0xf0]  ;;  %v2130_v26 = vld [vmem:[#allocation4 + $0x128] sm:$0xf]  ;;  %v2103_v63 = vor.u32 %v2921_v47, %v2100_v48 }
  0x73   :  { %1421 = vmatpush.bf16.msra.mxu1 %v2367_v1  ;;  %v2162_v1 = vld [vmem:[#allocation4 + $0x168] sm:$0xf]  ;;  %v2931_v27 = vld [vmem:[#allocation4 + $0x134] sm:$0xf0]  ;;  %v2387_v34 = vor.u32 %v2995_v24, %v2386_v23  ;;  %v2196_v23 = vld [vmem:[#allocation4 + $0x1b8] sm:$0xf0] }
  0x74   :  { %1446 = vmatpush.bf16.msrb.mxu2 %v2639_v60  ;;  %v2971_v60 = vld [vmem:[#allocation4 + $0x274] sm:$0xf0]  ;;  %v2163_v10 = vor.u32 %v2939_v2, %v2162_v1  ;;  %v2242_v37 = vld [vmem:[#allocation4 + $0x208] sm:$0xf]  ;;  %v2131_v40 = vor.u32 %v2931_v27, %v2130_v26  ;;  %v2917_v1 = vld [vmem:[#allocation4 + $0xcc] sm:$0xf] }
  0x75   :  { %1434 = vmatpush.bf16.msra.mxu3 %v2495_v4  ;;  %1409 = vmatmul.bf16.vlgmr.msra.gmra.mxu0 %v3281_v51  ;;  %v2291_v3 = vor.u32 %v2971_v60, %v2290_v59  ;;  %v2018_v4 = vld [vmem:[#allocation4 + $0x48] sm:$0xf]  ;;  %v2895_v31 = vld [vmem:[#allocation4 + $0x14] sm:$0xf0]  ;;  %v2953_v60 = vld [vmem:[#allocation4 + $0x1ec] sm:$0xf] }
  0x76   :  { %1492 = vmatpush.bf16.msrb.mxu0 %v2355_v12  ;;  %1422 = vmatmul.bf16.vlgmr.msra.gmra.mxu1 %v3285_v57  ;;  %v2999_v12 = vld [vmem:[#allocation4 + $0x354] sm:$0xf0]  ;;  %v2738_v52 = vld [vmem:[#allocation4 + $0x5e8] sm:$0xf]  ;;  %v2084_v2 = vld [vmem:[#allocation4 + $0xd8] sm:$0xf0] }
  0x77   :  { %1466 = vmatpush.bf16.msrb.mxu1 %v2099_v5  ;;  %v2903_v5 = vld [vmem:[#allocation4 + $0x54] sm:$0xf0]  ;;  %v2594_v54 = vld [vmem:[#allocation4 + $0x4c8] sm:$0xf]  ;;  %v2909_v26 = vld [vmem:[#allocation4 + $0x8c] sm:$0xf] }
  0x78   :  { %1447 = vmatpush.bf16.msrb.mxu2 %v2623_v13  ;;  %1435 = vmatmul.bf16.vlgmr.msra.gmra.mxu3 %v3297_v30  ;;  %v2019_v13 = vor.u32 %v2903_v5, %v2018_v4  ;;  %v3051_v33 = vld [vmem:[#allocation4 + $0x4f4] sm:$0xf0]  ;;  %v2722_v5 = vld [vmem:[#allocation4 + $0x5c8] sm:$0xf]  ;;  %v2052_v27 = vld [vmem:[#allocation4 + $0x98] sm:$0xf0] }
  0x79   :  { %1460 = vmatpush.bf16.msrb.mxu3 %v2751_v9  ;;  %v2967_v9 = vld [vmem:[#allocation4 + $0x254] sm:$0xf0]  ;;  %v2562_v20 = vld [vmem:[#allocation4 + $0x488] sm:$0xf] }
  0x7a   :  { %1493 = vmatpush.bf16.msrb.mxu0 %v2339_v25  ;;  %v2003_v25 = vor.u32 %v2899_v18, %v2002_v17  ;;  %v2959_v38 = vld [vmem:[#allocation4 + $0x214] sm:$0xf0]  ;;  %v2706_v18 = vld [vmem:[#allocation4 + $0x5a8] sm:$0xf] }
  0x7b   :  { %1467 = vmatpush.bf16.msrb.mxu1 %v2083_v22  ;;  %1448 = vmatmul.bf16.vlgmr.msrb.gmra.mxu2 %v3299_v35  ;;  %v2147_v22 = vor.u32 %v2935_v15, %v2146_v14  ;;  %v2991_v41 = vld [vmem:[#allocation4 + $0x314] sm:$0xf0]  ;;  %v2243_v50 = vor.u32 %v2959_v38, %v2242_v37  ;;  %v2913_v14 = vld [vmem:[#allocation4 + $0xac] sm:$0xf]  ;;  %v2068_v15 = vld [vmem:[#allocation4 + $0xb8] sm:$0xf0]  ;;  %v2055_v38 = vor.u32 %v2909_v26, %v2052_v27 }
  0x7c   :  { %1505 = vmatpush.bf16.msra.mxu2 %v2483_v16  ;;  %v2275_v16 = vor.u32 %v2967_v9, %v2274_v8  ;;  %v3087_v43 = vld [vmem:[#allocation4 + $0x614] sm:$0xf0]  ;;  %v2578_v8 = vld [vmem:[#allocation4 + $0x4a8] sm:$0xf]  ;;  %v2071_v24 = vor.u32 %v2913_v14, %v2068_v15  ;;  %v2180_v37 = vld [vmem:[#allocation4 + $0x198] sm:$0xf0] }
  0x7d   :  { %1479 = vmatpush.bf16.msra.mxu3 %v2227_v19  ;;  %v2403_v19 = vor.u32 %v2999_v12, %v2402_v11  ;;  %v3043_v9 = vld [vmem:[#allocation4 + $0x4b4] sm:$0xf0]  ;;  %v2212_v11 = vld [vmem:[#allocation4 + $0x1d8] sm:$0xf0]  ;;  %v2087_v12 = vor.u32 %v2917_v1, %v2084_v2  ;;  %v2530_v47 = vld [vmem:[#allocation4 + $0x448] sm:$0xf] }
  0x7e   :  { %1494 = vmatpush.bf16.msrb.mxu0 %v2323_v39  ;;  %v2370_v39 = vld [vmem:[#allocation4 + $0x308] sm:$0xf]  ;;  %v3039_v21 = vld [vmem:[#allocation4 + $0x494] sm:$0xf0]  ;;  %v2148_v1 = vld [vmem:[#allocation4 + $0x158] sm:$0xf0] }
  0x7f   :  { %1468 = vmatpush.bf16.msrb.mxu1 %v2067_v36  ;;  %v2114_v36 = vld [vmem:[#allocation4 + $0x108] sm:$0xf]  ;;  %v2371_v56 = vor.u32 %v2991_v41, %v2370_v39  ;;  %v2036_v41 = vld [vmem:[#allocation4 + $0x78] sm:$0xf0]  ;;  %v3031_v48 = vld [vmem:[#allocation4 + $0x454] sm:$0xf0] }
  0x80   :  { %1506 = vmatpush.bf16.msra.mxu2 %v2467_v28  ;;  %v1986_v28 = vld [vmem:[#allocation4 + $0x8] sm:$0xf]  ;;  %v2132_v14 = vld [vmem:[#allocation4 + $0x138] sm:$0xf0] }
  0x81   :  { %1480 = vmatpush.bf16.msra.mxu3 %v2211_v32  ;;  %v2610_v32 = vld [vmem:[#allocation4 + $0x4e8] sm:$0xf]  ;;  %v1987_v44 = vor.u32 %v2895_v31, %v1986_v28  ;;  %v2563_v28 = vor.u32 %v3039_v21, %v2562_v20  ;;  %v2893_v20 = vld [vmem:[#allocation4 + $0xc] sm:$0xf]  ;;  %v1988_v21 = vld [vmem:[#allocation4 + $0x18] sm:$0xf0] }
  0x82   :  { %1495 = vmatpush.bf16.msrb.mxu0 %v2307_v53  ;;  %v3083_v53 = vld [vmem:[#allocation4 + $0x5f4] sm:$0xf0]  ;;  %v2690_v31 = vld [vmem:[#allocation4 + $0x588] sm:$0xf]  ;;  %v2484_v26 = vld [vmem:[#allocation4 + $0x3f8] sm:$0xf0] }
  0x83   :  { %1469 = vmatpush.bf16.msrb.mxu1 %v2051_v49  ;;  %v2611_v49 = vor.u32 %v3051_v33, %v2610_v32  ;;  %v3071_v32 = vld [vmem:[#allocation4 + $0x594] sm:$0xf0]  ;;  %v2546_v33 = vld [vmem:[#allocation4 + $0x468] sm:$0xf] }
  0x84   :  { %1507 = vmatpush.bf16.msra.mxu2 %v2451_v42  ;;  %v2754_v42 = vld [vmem:[#allocation4 + $0x608] sm:$0xf]  ;;  %v2691_v39 = vor.u32 %v3071_v32, %v2690_v31  ;;  %v2981_v31 = vld [vmem:[#allocation4 + $0x2cc] sm:$0xf]  ;;  %v1991_v32 = vor.u32 %v2893_v20, %v1988_v21 }
  0x85   :  { %1481 = vmatpush.bf16.msra.mxu3 %v2195_v46  ;;  %v2927_v46 = vld [vmem:[#allocation4 + $0x114] sm:$0xf0]  ;;  %v2755_v59 = vor.u32 %v3087_v43, %v2754_v42  ;;  %v3001_v20 = vld [vmem:[#allocation4 + $0x36c] sm:$0xf] }
  0x86   :  { %1496 = vmatpush.bf16.msrb.mxu0 %v2291_v3  ;;  %v2115_v62 = vor.u32 %v2927_v46, %v2114_v36  ;;  %v2941_v36 = vld [vmem:[#allocation4 + $0x18c] sm:$0xf]  ;;  %v3067_v46 = vld [vmem:[#allocation4 + $0x574] sm:$0xf0] }
  0x87   :  { %1470 = vmatpush.bf16.msrb.mxu1 %v2035_v0  ;;  %v2739_v0 = vor.u32 %v3083_v53, %v2738_v52  ;;  %v2183_v43 = vor.u32 %v2941_v36, %v2180_v37  ;;  %v2116_v36 = vld [vmem:[#allocation4 + $0x118] sm:$0xf0] }
  0x88   :  { %1508 = vmatpush.bf16.msra.mxu2 %v2435_v58  ;;  %2761 = vmatmul.msk.bf16.vlgmr.msrb.gmra.mxu3 %vm1280_vm0, %v3293_v45  ;;  %v3047_v58 = vld [vmem:[#allocation4 + $0x4d4] sm:$0xf0] }
  0x89   :  { %1482 = vmatpush.bf16.msra.mxu3 %v2179_v61  ;;  %v2228_v61 = vld [vmem:[#allocation4 + $0x1f8] sm:$0xf0]  ;;  %v2595_v3 = vor.u32 %v3047_v58, %v2594_v54  ;;  %v2901_v54 = vld [vmem:[#allocation4 + $0x4c] sm:$0xf]  ;;  %v2531_v58 = vor.u32 %v3031_v48, %v2530_v47 }
  0x8a   :  { %1497 = vmatpush.bf16.msrb.mxu0 %v2275_v16  ;;  %v2231_v4 = vor.u32 %v2953_v60, %v2228_v61  ;;  %v2579_v16 = vor.u32 %v3043_v9, %v2578_v8  ;;  %v2658_v60 = vld [vmem:[#allocation4 + $0x548] sm:$0xf]  ;;  %v3063_v61 = vld [vmem:[#allocation4 + $0x554] sm:$0xf0]  ;;  %v3045_v47 = vld [vmem:[#allocation4 + $0x4cc] sm:$0xf] }
  0x8b   :  { %1471 = vmatpush.bf16.msrb.mxu1 %v2019_v13  ;;  %v2642_v9 = vld [vmem:[#allocation4 + $0x528] sm:$0xf]  ;;  %v2596_v48 = vld [vmem:[#allocation4 + $0x4d8] sm:$0xf0] }
  0x8c   :  { %1509 = vmatpush.bf16.msra.mxu2 %v2419_v6  ;;  %v3079_v6 = vld [vmem:[#allocation4 + $0x5d4] sm:$0xf0] }
  0x8d   :  { %1483 = vmatpush.bf16.msra.mxu3 %v2163_v10  ;;  %v2949_v10 = vld [vmem:[#allocation4 + $0x1cc] sm:$0xf]  ;;  %v2723_v13 = vor.u32 %v3079_v6, %v2722_v5  ;;  %v2004_v5 = vld [vmem:[#allocation4 + $0x38] sm:$0xf0] }
  0x8e   :  { %1498 = vmatpush.bf16.msrb.mxu0 %v2259_v29  ;;  %v2215_v17 = vor.u32 %v2949_v10, %v2212_v11  ;;  %v3059_v10 = vld [vmem:[#allocation4 + $0x534] sm:$0xf0]  ;;  %v2498_v11 = vld [vmem:[#allocation4 + $0x408] sm:$0xf] }
  0x8f   :  { %1472 = vmatpush.bf16.msrb.mxu1 %v2003_v25 }
  0x90   :  { %1510 = vmatpush.bf16.msra.mxu2 %v2403_v19  ;;  %v3075_v19 = vld [vmem:[#allocation4 + $0x5b4] sm:$0xf0] }
  0x91   :  { %1484 = vmatpush.bf16.msra.mxu3 %v2147_v22  ;;  %v2945_v22 = vld [vmem:[#allocation4 + $0x1ac] sm:$0xf]  ;;  %v2707_v25 = vor.u32 %v3075_v19, %v2706_v18  ;;  %v2643_v18 = vor.u32 %v3059_v10, %v2642_v9  ;;  %v2626_v19 = vld [vmem:[#allocation4 + $0x508] sm:$0xf]  ;;  %v2436_v10 = vld [vmem:[#allocation4 + $0x398] sm:$0xf0] }
  0x92   :  { %1499 = vmatpush.bf16.msrb.mxu0 %v2243_v50  ;;  %v2199_v29 = vor.u32 %v2945_v22, %v2196_v23  ;;  %v2164_v50 = vld [vmem:[#allocation4 + $0x178] sm:$0xf0] }
  0x93   :  { %1473 = vmatpush.bf16.msrb.mxu1 %v1987_v44  ;;  %v2674_v44 = vld [vmem:[#allocation4 + $0x568] sm:$0xf] }
  0x94   :  { %1511 = vmatpush.bf16.msra.mxu2 %v2387_v34  ;;  %v3035_v34 = vld [vmem:[#allocation4 + $0x474] sm:$0xf0]  ;;  %v2675_v53 = vor.u32 %v3067_v46, %v2674_v44  ;;  %v2468_v46 = vld [vmem:[#allocation4 + $0x3d8] sm:$0xf0] }
  0x95   :  { %1485 = vmatpush.bf16.msra.mxu3 %v2131_v40  ;;  %1500 = vmatmul.bf16.vlgmr.msrb.gmra.mxu0 %v3281_v51  ;;  %v2905_v40 = vld [vmem:[#allocation4 + $0x6c] sm:$0xf]  ;;  %v2547_v42 = vor.u32 %v3035_v34, %v2546_v33  ;;  %v2340_v33 = vld [vmem:[#allocation4 + $0x2d8] sm:$0xf0] }
  0x96   :  { %1551 = vmatpush.bf16.msra.mxu0 %v2755_v59  ;;  %1474 = vmatmul.bf16.vlgmr.msrb.gmra.mxu1 %v3283_v55  ;;  %v2039_v52 = vor.u32 %v2905_v40, %v2036_v41  ;;  %v2925_v34 = vld [vmem:[#allocation4 + $0x10c] sm:$0xf] }
  0x97   :  { %1518 = vmatpush.bf16.msra.mxu1 %v2611_v49  ;;  %v2937_v49 = vld [vmem:[#allocation4 + $0x16c] sm:$0xf]  ;;  %v2119_v44 = vor.u32 %v2925_v34, %v2116_v36 }
  0x98   :  { %1512 = vmatpush.bf16.msra.mxu2 %v2371_v56  ;;  %v2020_v56 = vld [vmem:[#allocation4 + $0x58] sm:$0xf0]  ;;  %v2167_v59 = vor.u32 %v2937_v49, %v2164_v50  ;;  %v2977_v50 = vld [vmem:[#allocation4 + $0x2ac] sm:$0xf] }
  0x99   :  { %1486 = vmatpush.bf16.msra.mxu3 %v2115_v62  ;;  %v2514_v62 = vld [vmem:[#allocation4 + $0x428] sm:$0xf]  ;;  %v2023_v2 = vor.u32 %v2901_v54, %v2020_v56  ;;  %v2724_v54 = vld [vmem:[#allocation4 + $0x5d8] sm:$0xf0]  ;;  %v2997_v34 = vld [vmem:[#allocation4 + $0x34c] sm:$0xf] }
  0x9a   :  { %1570 = vmatpush.bf16.msrb.mxu0 %v2231_v4  ;;  %v2897_v4 = vld [vmem:[#allocation4 + $0x2c] sm:$0xf] }
  0x9b   :  { %1519 = vmatpush.bf16.msra.mxu1 %v2595_v3  ;;  %1513 = vmatmul.bf16.vlgmr.msra.gmra.mxu2 %v3285_v57  ;;  %v2659_v3 = vor.u32 %v3063_v61, %v2658_v60  ;;  %v2007_v15 = vor.u32 %v2897_v4, %v2004_v5  ;;  %v2452_v61 = vld [vmem:[#allocation4 + $0x3b8] sm:$0xf0] }
  0x9c   :  { %1557 = vmatpush.bf16.msrb.mxu2 %v2103_v63  ;;  %1487 = vmatmul.bf16.vlgmr.msra.gmra.mxu3 %v3289_v7  ;;  %v3027_v63 = vld [vmem:[#allocation4 + $0x434] sm:$0xf0]  ;;  %v2708_v4 = vld [vmem:[#allocation4 + $0x5b8] sm:$0xf0] }
  0x9d   :  { %1531 = vmatpush.bf16.msrb.mxu3 %v2739_v0  ;;  %v2933_v0 = vld [vmem:[#allocation4 + $0x14c] sm:$0xf]  ;;  %v2515_v6 = vor.u32 %v3027_v63, %v2514_v62  ;;  %v2580_v63 = vld [vmem:[#allocation4 + $0x4b8] sm:$0xf0] }
  0x9e   :  { %1571 = vmatpush.bf16.msrb.mxu0 %v2215_v17  ;;  %v2151_v8 = vor.u32 %v2933_v0, %v2148_v1  ;;  %v2356_v17 = vld [vmem:[#allocation4 + $0x2f8] sm:$0xf0]  ;;  %v3041_v62 = vld [vmem:[#allocation4 + $0x4ac] sm:$0xf] }
  0x9f   :  { %1520 = vmatpush.bf16.msra.mxu1 %v2579_v16  ;;  %v2985_v16 = vld [vmem:[#allocation4 + $0x2ec] sm:$0xf] }
  0xa0   :  { %1558 = vmatpush.bf16.msrb.mxu2 %v2087_v12  ;;  %v3023_v12 = vld [vmem:[#allocation4 + $0x414] sm:$0xf0]  ;;  %v2359_v27 = vor.u32 %v2985_v16, %v2356_v17  ;;  %v2973_v1 = vld [vmem:[#allocation4 + $0x28c] sm:$0xf]  ;;  %v2692_v17 = vld [vmem:[#allocation4 + $0x598] sm:$0xf0] }
  0xa1   :  { %1532 = vmatpush.bf16.msrb.mxu3 %v2723_v13  ;;  %v2929_v13 = vld [vmem:[#allocation4 + $0x12c] sm:$0xf]  ;;  %v2499_v22 = vor.u32 %v3023_v12, %v2498_v11  ;;  %v2564_v12 = vld [vmem:[#allocation4 + $0x498] sm:$0xf0] }
  0xa2   :  { %1572 = vmatpush.bf16.msrb.mxu0 %v2199_v29  ;;  %v2135_v23 = vor.u32 %v2929_v13, %v2132_v14  ;;  %v2612_v29 = vld [vmem:[#allocation4 + $0x4f8] sm:$0xf0]  ;;  %v3037_v11 = vld [vmem:[#allocation4 + $0x48c] sm:$0xf] }
  0xa3   :  { %1521 = vmatpush.bf16.msra.mxu1 %v2563_v28  ;;  %v3049_v28 = vld [vmem:[#allocation4 + $0x4ec] sm:$0xf] }
  0xa4   :  { %1559 = vmatpush.bf16.msrb.mxu2 %v2071_v24  ;;  %v3055_v24 = vld [vmem:[#allocation4 + $0x514] sm:$0xf0]  ;;  %v2615_v41 = vor.u32 %v3049_v28, %v2612_v29  ;;  %v2969_v14 = vld [vmem:[#allocation4 + $0x26c] sm:$0xf]  ;;  %v2676_v29 = vld [vmem:[#allocation4 + $0x578] sm:$0xf0] }
  0xa5   :  { %1533 = vmatpush.bf16.msrb.mxu3 %v2707_v25  ;;  %2762 = vmatmul.msk.bf16.vlgmr.msra.gmra.mxu0 %vm1280_vm0, %v3293_v45  ;;  %v3017_v25 = vld [vmem:[#allocation4 + $0x3ec] sm:$0xf]  ;;  %v2627_v37 = vor.u32 %v3055_v24, %v2626_v19  ;;  %v2567_v19 = vor.u32 %v3037_v11, %v2564_v12  ;;  %v2548_v24 = vld [vmem:[#allocation4 + $0x478] sm:$0xf0] }
  0xa6   :  { %1573 = vmatpush.bf16.msrb.mxu0 %v2183_v43  ;;  %v2487_v40 = vor.u32 %v3017_v25, %v2484_v26  ;;  %v2343_v43 = vor.u32 %v2981_v31, %v2340_v33  ;;  %v2965_v26 = vld [vmem:[#allocation4 + $0x24c] sm:$0xf] }
  0xa7   :  { %1522 = vmatpush.bf16.msra.mxu1 %v2547_v42  ;;  %v3013_v42 = vld [vmem:[#allocation4 + $0x3cc] sm:$0xf] }
  0xa8   :  { %1560 = vmatpush.bf16.msrb.mxu2 %v2055_v38  ;;  %v3081_v38 = vld [vmem:[#allocation4 + $0x5ec] sm:$0xf]  ;;  %v2471_v56 = vor.u32 %v3013_v42, %v2468_v46 }
  0xa9   :  { %1534 = vmatpush.bf16.msrb.mxu3 %v2691_v39  ;;  %v2740_v39 = vld [vmem:[#allocation4 + $0x5f8] sm:$0xf0]  ;;  %v3065_v28 = vld [vmem:[#allocation4 + $0x56c] sm:$0xf] }
  0xaa   :  { %1574 = vmatpush.bf16.msrb.mxu0 %v2167_v59  ;;  %v2743_v49 = vor.u32 %v3081_v38, %v2740_v39  ;;  %v3009_v59 = vld [vmem:[#allocation4 + $0x3ac] sm:$0xf]  ;;  %v2404_v38 = vld [vmem:[#allocation4 + $0x358] sm:$0xf0] }
  0xab   :  { %1523 = vmatpush.bf16.msra.mxu1 %v2531_v58  ;;  %v2599_v58 = vor.u32 %v3045_v47, %v2596_v48  ;;  %v2455_v5 = vor.u32 %v3009_v59, %v2452_v61  ;;  %v3029_v39 = vld [vmem:[#allocation4 + $0x44c] sm:$0xf]  ;;  %v2660_v47 = vld [vmem:[#allocation4 + $0x558] sm:$0xf0]  ;;  %v2407_v48 = vor.u32 %v2997_v34, %v2404_v38 }
  0xac   :  { %1561 = vmatpush.bf16.msrb.mxu2 %v2039_v52  ;;  %v2324_v52 = vld [vmem:[#allocation4 + $0x2b8] sm:$0xf0]  ;;  %v2961_v42 = vld [vmem:[#allocation4 + $0x22c] sm:$0xf] }
  0xad   :  { %1535 = vmatpush.bf16.msrb.mxu3 %v2675_v53  ;;  %v3077_v53 = vld [vmem:[#allocation4 + $0x5cc] sm:$0xf]  ;;  %v2327_v60 = vor.u32 %v2977_v50, %v2324_v52 }
  0xae   :  { %1575 = vmatpush.bf16.msrb.mxu0 %v2151_v8  ;;  %v2727_v0 = vor.u32 %v3077_v53, %v2724_v54  ;;  %v3005_v8 = vld [vmem:[#allocation4 + $0x38c] sm:$0xf]  ;;  %v2388_v53 = vld [vmem:[#allocation4 + $0x338] sm:$0xf0] }
  0xaf   :  { %1524 = vmatpush.bf16.msra.mxu1 %v2515_v6  ;;  %v2583_v6 = vor.u32 %v3041_v62, %v2580_v63  ;;  %v3061_v46 = vld [vmem:[#allocation4 + $0x54c] sm:$0xf]  ;;  %v2644_v63 = vld [vmem:[#allocation4 + $0x538] sm:$0xf0] }
  0xb0   :  { %1562 = vmatpush.bf16.msrb.mxu2 %v2023_v2  ;;  %v2308_v2 = vld [vmem:[#allocation4 + $0x298] sm:$0xf0]  ;;  %v2993_v50 = vld [vmem:[#allocation4 + $0x32c] sm:$0xf] }
  0xb1   :  { %1536 = vmatpush.bf16.msrb.mxu3 %v2659_v3  ;;  %v3073_v3 = vld [vmem:[#allocation4 + $0x5ac] sm:$0xf]  ;;  %v2311_v9 = vor.u32 %v2973_v1, %v2308_v2  ;;  %v2756_v1 = vld [vmem:[#allocation4 + $0x618] sm:$0xf0] }
  0xb2   :  { %1576 = vmatpush.bf16.msrb.mxu0 %v2135_v23  ;;  %v2711_v13 = vor.u32 %v3073_v3, %v2708_v4  ;;  %v3321_v16 = vpop.f32.mrf.mxu0  ;;  %v3033_v23 = vld [vmem:[#allocation4 + $0x46c] sm:$0xf]  ;;  %v2391_v3 = vor.u32 %v2993_v50, %v2388_v53 }
  0xb3   :  { %1525 = vmatpush.bf16.msra.mxu1 %v2499_v22  ;;  %v2420_v22 = vld [vmem:[#allocation4 + $0x378] sm:$0xf0]  ;;  %v2551_v33 = vor.u32 %v3033_v23, %v2548_v24  ;;  %v3025_v54 = vld [vmem:[#allocation4 + $0x42c] sm:$0xf] }
  0xb4   :  { %1563 = vmatpush.bf16.msrb.mxu2 %v2007_v15  ;;  %v2292_v15 = vld [vmem:[#allocation4 + $0x278] sm:$0xf0]  ;;  %v2957_v59 = vld [vmem:[#allocation4 + $0x20c] sm:$0xf] }
  0xb5   :  { %1537 = vmatpush.bf16.msrb.mxu3 %v2643_v18  ;;  %v2439_v18 = vor.u32 %v3005_v8, %v2436_v10  ;;  %v2295_v21 = vor.u32 %v2969_v14, %v2292_v15  ;;  %v3057_v61 = vld [vmem:[#allocation4 + $0x52c] sm:$0xf]  ;;  %v3103_v24 = vld [vmem:[#allocation7 + $0x78] sm:$0xff] }
  0xb6   :  { %1526 = vmatmul.bf16.vlgmr.msra.gmra.mxu1 %v3297_v30  ;;  %1577 = vmatpush.bf16.msrb.mxu0 %v2119_v44  ;;  %v2989_v8 = vld [vmem:[#allocation4 + $0x30c] sm:$0xf]  ;;  %v2647_v11 = vor.u32 %v3057_v61, %v2644_v63 }
  0xb7   :  { %1583 = vmatpush.bf16.msrb.mxu1 %v2359_v27  ;;  %v2276_v27 = vld [vmem:[#allocation4 + $0x258] sm:$0xf0]  ;;  %v3021_v12 = vld [vmem:[#allocation4 + $0x40c] sm:$0xf] }
  0xb8   :  { %1564 = vmatpush.bf16.msrb.mxu2 %v1991_v32  ;;  %v2423_v32 = vor.u32 %v3001_v20, %v2420_v22  ;;  %v2279_v36 = vor.u32 %v2965_v26, %v2276_v27  ;;  %v3053_v15 = vld [vmem:[#allocation4 + $0x50c] sm:$0xf]  ;;  %v3095_v20 = vld [vmem:[#allocation7 + $0x38] sm:$0xff] }
  0xb9   :  { %1538 = vmatpush.bf16.msrb.mxu3 %v2627_v37  ;;  %1578 = vmatmul.bf16.vlgmr.msrb.gmra.mxu0 %v3289_v7  ;;  %v3323_v25 = vpop.f32.mrf.mxu1  ;;  %v3101_v34 = vld [vmem:[#allocation7 + $0x68] sm:$0xff] }
  0xba   :  { %1622 = vmatpush.bf16.msra.mxu0 %v2743_v49  ;;  %v3325_v31 = vpop.f32.mrf.mxu2  ;;  %v1295_v44 = vpop.f32.mrf.mxu0  ;;  %v3097_v50 = vld [vmem:[#allocation7 + $0x48] sm:$0xff] }
  0xbb   :  { %1584 = vmatpush.bf16.msrb.mxu1 %v2343_v43  ;;  %1565 = vmatmul.bf16.vlgmr.msrb.gmra.mxu2 %v3283_v55  ;;  %v3069_v55 = vld [vmem:[#allocation4 + $0x58c] sm:$0xf]  ;;  %v2260_v43 = vld [vmem:[#allocation4 + $0x238] sm:$0xf0] }
  0xbc   :  { %1609 = vmatpush.bf16.msra.mxu2 %v2615_v41  ;;  %1539 = vmatmul.bf16.vlgmr.msrb.gmra.mxu3 %v3299_v35  ;;  %v2695_v7 = vor.u32 %v3069_v55, %v2692_v17  ;;  %v2679_v41 = vor.u32 %v3065_v28, %v2676_v29  ;;  %v2263_v52 = vor.u32 %v2961_v42, %v2260_v43  ;;  %v2628_v55 = vld [vmem:[#allocation4 + $0x518] sm:$0xf0]  ;;  %v3089_v43 = vld [vmem:[#allocation7 + $0x8] sm:$0xff] }
  0xbd   :  { %1596 = vmatpush.bf16.msra.mxu3 %v2487_v40  ;;  %v3327_v37 = vpop.f32.mrf.mxu3  ;;  %v2532_v40 = vld [vmem:[#allocation4 + $0x458] sm:$0xf0] }
  0xbe   :  { %1623 = vmatpush.bf16.msra.mxu0 %v2727_v0  ;;  %v2535_v49 = vor.u32 %v3029_v39, %v2532_v40  ;;  %v3085_v0 = vld [vmem:[#allocation4 + $0x60c] sm:$0xf]  ;;  %v3099_v42 = vld [vmem:[#allocation7 + $0x58] sm:$0xff] }
  0xbf   :  { %1585 = vmatpush.bf16.msrb.mxu1 %v2327_v60  ;;  %v2244_v60 = vld [vmem:[#allocation4 + $0x218] sm:$0xf0]  ;;  %v2759_v14 = vor.u32 %v3085_v0, %v2756_v1 }
  0xc0   :  { %1610 = vmatpush.bf16.msra.mxu2 %v2599_v58  ;;  %v2663_v58 = vor.u32 %v3061_v46, %v2660_v47  ;;  %v3088_v47 = vld [vmem:[#allocation7] sm:$0xff]  ;;  %v3111_v1 = vld [vmem:[#allocation7 + $0xb8] sm:$0xff] }
  0xc1   :  { %1597 = vmatpush.bf16.msra.mxu3 %v2471_v56  ;;  %v2516_v56 = vld [vmem:[#allocation4 + $0x438] sm:$0xf0]  ;;  %v1308_v62 = vpop.f32.mrf.mxu1 }
  0xc2   :  { %1624 = vmatpush.bf16.msra.mxu0 %v2711_v13  ;;  %v1321_v2 = vpop.f32.mrf.mxu2  ;;  %v2519_v4 = vor.u32 %v3025_v54, %v2516_v56  ;;  %v2500_v13 = vld [vmem:[#allocation4 + $0x418] sm:$0xf0] }
  0xc3   :  { %1586 = vmatpush.bf16.msrb.mxu1 %v2311_v9  ;;  %v2372_v9 = vld [vmem:[#allocation4 + $0x318] sm:$0xf0]  ;;  %v3110_v2 = vld [vmem:[#allocation7 + $0xb0] sm:$0xff] }
  0xc4   :  { %1611 = vmatpush.bf16.msra.mxu2 %v2583_v6  ;;  %v2247_v6 = vor.u32 %v2957_v59, %v2244_v60 }
  0xc5   :  { %1598 = vmatpush.bf16.msra.mxu3 %v2455_v5  ;;  %v3329_v5 = vld [vmem:[#allocation6] sm:$0xf]  ;;  %v1334_v10 = vpop.f32.mrf.mxu3 }
  0xc6   :  { %1625 = vmatpush.bf16.msra.mxu0 %v2695_v7  ;;  %v292_v17 = vperm.slane %v3329_v5, 0  ;;  %v3094_v7 = vld [vmem:[#allocation7 + $0x30] sm:$0xff]  ;;  %v293_v54 = vperm.slane %v3329_v5, 1 }
  0xc7   :  { %1587 = vmatpush.bf16.msrb.mxu1 %v2295_v21  ;;  %v2631_v21 = vor.u32 %v3053_v15, %v2628_v55  ;;  %v3107_v55 = vld [vmem:[#allocation7 + $0x98] sm:$0xff] }
  0xc8   :  { %1612 = vmatpush.bf16.msra.mxu2 %v2567_v19  ;;  %v2503_v19 = vor.u32 %v3021_v12, %v2500_v13  ;;  %v1294_v22 = vadd.f32 %v3321_v16, %v292_v17  ;;  %v3093_v16 = vld [vmem:[#allocation7 + $0x28] sm:$0xff]  ;;  %v3106_v17 = vld [vmem:[#allocation7 + $0x90] sm:$0xff] }
  0xc9   :  { %1599 = vmatpush.bf16.msra.mxu3 %v2439_v18  ;;  %v2375_v18 = vor.u32 %v2989_v8, %v2372_v9  ;;  %v3109_v9 = vld [vmem:[#allocation7 + $0xa8] sm:$0xff] }
  0xca   :  { %1626 = vmatpush.bf16.msra.mxu0 %v2679_v41  ;;  %v1371_v23 = vpop.f32.mrf.mxu2  ;;  %v1307_v26 = vadd.f32 %v3323_v25, %v1294_v22  ;;  %v3091_v25 = vld [vmem:[#allocation7 + $0x18] sm:$0xff] }
  0xcb   :  { %1588 = vmatpush.bf16.msrb.mxu1 %v2279_v36 }
  0xcc   :  { %1613 = vmatpush.bf16.msra.mxu2 %v2551_v33  ;;  %v1320_v28 = vadd.f32 %v3325_v31, %v1307_v26  ;;  %v3092_v33 = vld [vmem:[#allocation7 + $0x20] sm:$0xff]  ;;  %v3090_v31 = vld [vmem:[#allocation7 + $0x10] sm:$0xff] }
  0xcd   :  { %1600 = vmatpush.bf16.msra.mxu3 %v2423_v32  ;;  %v3104_v26 = vld [vmem:[#allocation7 + $0x80] sm:$0xff] }
  0xce   :  { %1627 = vmatpush.bf16.msra.mxu0 %v2663_v58 }
  0xcf   :  { %1589 = vmatpush.bf16.msrb.mxu1 %v2263_v52  ;;  %v3096_v52 = vld [vmem:[#allocation7 + $0x40] sm:$0xff] }
  0xd0   :  { %1614 = vmatpush.bf16.msra.mxu2 %v2535_v49 }
  0xd1   :  { %1601 = vmatpush.bf16.msra.mxu3 %v2407_v48 }
  0xd2   :  { %1628 = vmatpush.bf16.msra.mxu0 %v2647_v11  ;;  %v1345_v27 = vpop.f32.mrf.mxu0  ;;  %v1373_v32 = vpop.f32.mrf.mxu2  ;;  %v3108_v11 = vld [vmem:[#allocation7 + $0xa0] sm:$0xff] }
  0xd3   :  { %1590 = vmatpush.bf16.msrb.mxu1 %v2247_v6  ;;  %v1358_v29 = vpop.f32.mrf.mxu1 }
  0xd4   :  { %1615 = vmatpush.bf16.msra.mxu2 %v2519_v4 }
  0xd5   :  { %1602 = vmatpush.bf16.msra.mxu3 %v2391_v3 }
  0xd6   :  { %1591 = vmatmul.bf16.vlgmr.msrb.gmra.mxu1 %v3281_v51  ;;  %1629 = vmatpush.bf16.msra.mxu0 %v2631_v21  ;;  %v3102_v51 = vld [vmem:[#allocation7 + $0x70] sm:$0xff]  ;;  %v3105_v21 = vld [vmem:[#allocation7 + $0x88] sm:$0xff] }
  0xd7   :  { %1642 = vmatpush.bf16.msra.mxu1 %v2759_v14 }
  0xd8   :  { %1616 = vmatpush.bf16.msra.mxu2 %v2503_v19 }
  0xd9   :  { %1603 = vmatpush.bf16.msra.mxu3 %v2375_v18  ;;  %1630 = vmatmul.bf16.vlgmr.msra.gmra.mxu0 %v3299_v35  ;;  %v3100_v35 = vld [vmem:[#allocation7 + $0x60] sm:$0xff] }
  0xda   :  { %v1347_v38 = vpop.f32.mrf.mxu0 }
  0xdb   :  { %1929 = vmatpush.bf16.msrb.mxu1 %v3103_v24  ;;  %1617 = vmatmul.bf16.vlgmr.msra.gmra.mxu2 %v3297_v30  ;;  %v1384_v36 = vpop.f32.mrf.mxu3  ;;  %v1360_v39 = vpop.f32.mrf.mxu1 }
  0xdc   :  { %1604 = vmatmul.bf16.vlgmr.msra.gmra.mxu3 %v3285_v57  ;;  %v1333_v57 = vadd.f32 %v3327_v37, %v1320_v28  ;;  %v3098_v37 = vld [vmem:[#allocation7 + $0x50] sm:$0xff]  ;;  %v1385_v58 = vadd.f32 %v1384_v36, %v293_v54  ;;  %1942 = vmatpush.bf16.msrb.mxu2 %v3111_v1  ;;  %v295_v54 = vperm.slane %v3329_v5, 3 }
  0xdd   :  { %1916 = vmatpush.bf16.msrb.mxu3 %v3095_v20  ;;  %v3118_v28 = vld [vmem:[#allocation7 + $0xf0] sm:$0xff] }
  0xde   :  { %v1346_v30 = vadd.f32 %v1345_v27, %v1333_v57  ;;  %v1397_v40 = vpop.f32.mrf.mxu2  ;;  %v3117_v57 = vld [vmem:[#allocation7 + $0xe8] sm:$0xff] }
  0xdf   :  { %1930 = vmatpush.bf16.msrb.mxu1 %v3102_v51  ;;  %v1398_v62 = vadd.f32 %v1397_v40, %v1385_v58 }
  0xe0   :  { %v1359_v41 = vadd.f32 %v1358_v29, %v1346_v30  ;;  %1943 = vmatpush.bf16.msrb.mxu2 %v3110_v2  ;;  %v294_v29 = vperm.slane %v3329_v5, 2  ;;  %v3116_v30 = vld [vmem:[#allocation7 + $0xe0] sm:$0xff] }
  0xe1   :  { %1917 = vmatpush.bf16.msrb.mxu3 %v3094_v7 }
  0xe2   :  { %v1372_v44 = vadd.f32 %v1371_v23, %v1359_v41 }
  0xe3   :  { %1931 = vmatpush.bf16.msrb.mxu1 %v3101_v34  ;;  %v1386_v46 = vpop.f32.mrf.mxu3 }
  0xe4   :  { %v1648_v49 = vmax.f32 %v1372_v44, 0.0  ;;  %1944 = vmatpush.bf16.msrb.mxu2 %v3109_v9 }
  0xe5   :  { %1918 = vmatpush.bf16.msrb.mxu3 %v3093_v16  ;;  %v3119_v16 = vld [vmem:[#allocation7 + $0xf8] sm:$0xff] }
  0xe6   :  { %2763 = vmatmul.msk.bf16.vlgmr.msra.gmra.mxu1 %vm1280_vm0, %v3293_v45  ;;  %v1399_v48 = vpop.f32.mrf.mxu2  ;;  %v1652_v45 = vpack.c.bf16 %v1648_v49, %v1648_v49  ;;  %1955 = vmatpush.bf16.msrb.mxu0 %v3119_v16 }
  0xe7   :  { %1932 = vmatpush.bf16.msrb.mxu1 %v3100_v35  ;;  %v3115_v35 = vld [vmem:[#allocation7 + $0xd8] sm:$0xff] }
  0xe8   :  { %1945 = vmatpush.bf16.msrb.mxu2 %v3108_v11 }
  0xe9   :  { %1919 = vmatpush.bf16.msrb.mxu3 %v3092_v33 }
  0xea   :  { %1956 = vmatpush.bf16.msrb.mxu0 %v3118_v28 }
  0xeb   :  { %1933 = vmatpush.bf16.msrb.mxu1 %v3099_v42  ;;  %v3114_v42 = vld [vmem:[#allocation7 + $0xd0] sm:$0xff] }
  0xec   :  { %1946 = vmatpush.bf16.msrb.mxu2 %v3107_v55 }
  0xed   :  { %1920 = vmatpush.bf16.msrb.mxu3 %v3091_v25 }
  0xee   :  { %1957 = vmatpush.bf16.msrb.mxu0 %v3117_v57 }
  0xef   :  { %1934 = vmatpush.bf16.msrb.mxu1 %v3098_v37 }
  0xf0   :  { %1947 = vmatpush.bf16.msrb.mxu2 %v3106_v17 }
  0xf1   :  { %1921 = vmatpush.bf16.msrb.mxu3 %v3090_v31 }
  0xf2   :  { %v1410_v53 = vpop.f32.mrf.mxu0  ;;  %1958 = vmatpush.bf16.msrb.mxu0 %v3116_v30 }
  0xf3   :  { %1935 = vmatpush.bf16.msrb.mxu1 %v3097_v50  ;;  %v1423_v56 = vpop.f32.mrf.mxu1  ;;  %v1411_v0 = vadd.f32 %v1410_v53, %v1398_v62 }
  0xf4   :  { %1948 = vmatpush.bf16.msrb.mxu2 %v3105_v21 }
  0xf5   :  { %1922 = vmatpush.bf16.msrb.mxu3 %v3089_v43  ;;  %v1424_v4 = vadd.f32 %v1423_v56, %v1411_v0 }
  0xf6   :  { %1959 = vmatpush.bf16.msrb.mxu0 %v3115_v35 }
  0xf7   :  { %1936 = vmatpush.bf16.msrb.mxu1 %v3096_v52 }
  0xf8   :  { %1949 = vmatpush.bf16.msrb.mxu2 %v3104_v26 }
  0xf9   :  { %1923 = vmatpush.bf16.msrb.mxu3 %v3088_v47  ;;  %v3113_v47 = vld [vmem:[#allocation7 + $0xc8] sm:$0xff] }
  0xfa   :  { %v1412_v60 = vpop.f32.mrf.mxu0  ;;  %1960 = vmatpush.bf16.msrb.mxu0 %v3114_v42 }
  0xfb   :  { %v1436_v59 = vpop.f32.mrf.mxu3  ;;  %v1425_v63 = vpop.f32.mrf.mxu1 }
  0xfc   :  { %1924 = vmatmul.bf16.vlgmr.msrb.gmra.mxu3 %v1652_v45  ;;  %v1437_v8 = vadd.f32 %v1436_v59, %v1424_v4  ;;  %v3112_v45 = vld [vmem:[#allocation7 + $0xc0] sm:$0xff] }
  0xfe   :  { %v1449_v61 = vpop.f32.mrf.mxu2  ;;  %1961 = vmatpush.bf16.msrb.mxu0 %v3113_v47 }
  0xff   :  { %v1450_v10 = vadd.f32 %v1449_v61, %v1437_v8 }
 0x102   :  { %1962 = vmatpush.bf16.msrb.mxu0 %v3112_v45 }
 0x103   :  { %v1438_v3 = vpop.f32.mrf.mxu3 }
 0x106   :  { %v1451_v6 = vpop.f32.mrf.mxu2 }
 0x10b   :  { %v1462_v12 = vpop.f32.mrf.mxu3 }
 0x10c   :  { %v1463_v13 = vadd.f32 %v1462_v12, %v1450_v10 }
 0x10e   :  { %v1649_v14 = vmax.f32 %v1463_v13, 0.0 }
 0x110   :  { %v1653_v15 = vpack.c.bf16 %v1649_v14, %v1649_v14 }
 0x112   :  { %1937 = vmatmul.bf16.vlgmr.msrb.gmra.mxu1 %v1653_v15  ;;  %v1501_v19 = vpop.f32.mrf.mxu0  ;;  %v3128_v15 = vld [vmem:[%s3355_s4] ss:$0 sm:$0xff] }
 0x113   :  { %v1464_v18 = vpop.f32.mrf.mxu3  ;;  %v1475_v20 = vpop.f32.mrf.mxu1 }
 0x114   :  { %v1476_v33 = vadd.f32 %v1475_v20, %v294_v29 }
 0x11a   :  { %v1503_v23 = vpop.f32.mrf.mxu0 }
 0x11b   :  { %v1477_v7 = vpop.f32.mrf.mxu1 }
 0x11e   :  { %v1514_v24 = vpop.f32.mrf.mxu2 }
 0x11f   :  { %v1488_v22 = vpop.f32.mrf.mxu3 }
 0x120   :  { %v1489_v25 = vadd.f32 %v1488_v22, %v1476_v33 }
 0x122   :  { %v1553_v51 = vpop.f32.mrf.mxu0  ;;  %v1502_v38 = vadd.f32 %v1501_v19, %v1489_v25 }
 0x124   :  { %v1515_v39 = vadd.f32 %v1514_v24, %v1502_v38 }
 0x126   :  { %v1516_v32 = vpop.f32.mrf.mxu2 }
 0x127   :  { %v1490_v27 = vpop.f32.mrf.mxu3 }
 0x12a   :  { %v1555_v34 = vpop.f32.mrf.mxu0 }
 0x133   :  { %v1527_v36 = vpop.f32.mrf.mxu1 }
 0x134   :  { %v1528_v40 = vadd.f32 %v1527_v36, %v1515_v39 }
 0x136   :  { %v1579_v31 = vpop.f32.mrf.mxu0 }
 0x13b   :  { %v1529_v41 = vpop.f32.mrf.mxu1 }
 0x13e   :  { %v1566_v44 = vpop.f32.mrf.mxu2  ;;  %v1581_v49 = vpop.f32.mrf.mxu0 }
 0x13f   :  { %v1540_v43 = vpop.f32.mrf.mxu3  ;;  %v1567_v56 = vadd.f32 %v1566_v44, %v295_v54 }
 0x140   :  { %v1541_v37 = vadd.f32 %v1540_v43, %v1528_v40 }
 0x141   :  { %v1580_v59 = vadd.f32 %v1579_v31, %v1567_v56 }
 0x142   :  { %v1554_v46 = vadd.f32 %v1553_v51, %v1541_v37 }
 0x144   :  { %v1650_v48 = vmax.f32 %v1554_v46, 0.0 }
 0x146   :  { %v1654_v50 = vpack.c.bf16 %v1650_v48, %v1650_v48  ;;  %v1568_v53 = vpop.f32.mrf.mxu2 }
 0x147   :  { %v1542_v52 = vpop.f32.mrf.mxu3 }
 0x148   :  { %1950 = vmatmul.bf16.vlgmr.msrb.gmra.mxu2 %v1654_v50 }
 0x153   :  { %v1592_v58 = vpop.f32.mrf.mxu1 }
 0x154   :  { %v1593_v61 = vadd.f32 %v1592_v58, %v1580_v59 }
 0x156   :  { %v1631_v60 = vpop.f32.mrf.mxu0 }
 0x15b   :  { %v1594_v62 = vpop.f32.mrf.mxu1 }
 0x15e   :  { %v1618_v1 = vpop.f32.mrf.mxu2  ;;  %v1633_v3 = vpop.f32.mrf.mxu0 }
 0x15f   :  { %v1605_v63 = vpop.f32.mrf.mxu3 }
 0x160   :  { %v1606_v0 = vadd.f32 %v1605_v63, %v1593_v61 }
 0x162   :  { %v1619_v2 = vadd.f32 %v1618_v1, %v1606_v0 }
 0x163   :  { %v1644_v6 = vpop.f32.mrf.mxu1 }
 0x164   :  { %v1632_v4 = vadd.f32 %v1631_v60, %v1619_v2 }
 0x166   :  { %v1645_v8 = vadd.f32 %v1644_v6, %v1632_v4  ;;  %v1620_v10 = vpop.f32.mrf.mxu2 }
 0x167   :  { %v1607_v9 = vpop.f32.mrf.mxu3 }
 0x168   :  { %v1651_v11 = vmax.f32 %v1645_v8, 0.0 }
 0x16a   :  { %v1655_v12 = vpack.c.bf16 %v1651_v11, %v1651_v11 }
 0x16b   :  { %v1646_v5 = vpop.f32.mrf.mxu1 }
 0x16c   :  { %1963 = vmatmul.bf16.vlgmr.msrb.gmra.mxu0 %v1655_v12 }
 0x17f   :  { %v1925_v13 = vpop.f32.mrf.mxu3 }
 0x180   :  { %v1926_v55 = vadd.f32 %v3128_v15, %v1925_v13 }
 0x187   :  { %v1927_v14 = vpop.f32.mrf.mxu3 }
 0x18f   :  { %v1938_v17 = vpop.f32.mrf.mxu1 }
 0x190   :  { %v1939_v18 = vadd.f32 %v1938_v17, %v1926_v55 }
 0x197   :  { %v1940_v19 = vpop.f32.mrf.mxu1 }
 0x1cb   :  { %v1951_v20 = vpop.f32.mrf.mxu2 }
 0x1cc   :  { %v1952_v22 = vadd.f32 %v1951_v20, %v1939_v18 }
 0x1d3   :  { %v1953_v21 = vpop.f32.mrf.mxu2 }
 0x1e9   :  { %v1964_v23 = vpop.f32.mrf.mxu0 }
 0x1ea   :  { %v1965_v24 = vadd.f32 %v1964_v23, %v1952_v22 }
 0x1ec   :  { %1968 = vst [vmem:[%s3356_s5] sm:$0xff] %v1965_v24 }
 0x1f1   :  { %v1966_v7 = vpop.f32.mrf.mxu0 }
 0x1f2   :  { %1973 = vsyncpa [#allocation3], 1 }
 0x1f3   :  { %1974 = vsyncpa [#allocation5], 1 }
 0x1f4   :  { %1975 = vsyncpa [#allocation8], 1 }

</bundles_post_ra>
